<compile_context>
chip_gen: v7x
topology: tpu7x:2x2x1
jax: 0.10.0
libtpu: 0.0.40
codegen_flags: <defaults>
</compile_context>

<pallas_src>
import functools

import jax
import jax.numpy as jnp
import numpy as np
from jax.experimental import pallas as pl
from jax.experimental.pallas import tpu as pltpu


def _round_up(x, m):
    return ((x + m - 1) // m) * m


# ----------------------------------------------------------------------------
# Kernel: adaptive-avg-pool (windowed f32 reduction) + fc1/bn1/relu + fc2/bn2/
#         relu + fc3/bn3/relu + fc4, fully fused, bf16 MXU / f32 accumulate.
# ----------------------------------------------------------------------------
def _newsnet_mlp_kernel(x_ref, pw_ref, w1_ref, b1_ref, w2_ref, b2_ref,
                        w3_ref, b3_ref, w4_ref, b4_ref, o_ref):
    f32, bf16 = jnp.float32, jnp.bfloat16
    wmax, lp = pw_ref.shape

    # AdaptiveAvgPool1d as an in-kernel windowed reduction (pure VPU, f32).
    # x_ref holds window-major gathered embeddings: lane block j is the j-th
    # element of every pooling window; pw folds 1/window_size + padding mask.
    pw = pw_ref[...]
    pooled = x_ref[:, 0:lp].astype(f32) * pw[0:1, :]
    for j in range(1, wmax):                       # static unroll, wmax is tiny
        pooled = pooled + x_ref[:, j * lp:(j + 1) * lp].astype(f32) * pw[j:j + 1, :]

    def layer(h, w_ref, b_ref, relu=True):
        y = jnp.dot(h.astype(bf16), w_ref[...], preferred_element_type=f32) + b_ref[...]
        return jnp.maximum(y, 0.0) if relu else y

    h = layer(pooled, w1_ref, b1_ref)              # fc1 + bn1 (folded) + ReLU
    h = layer(h, w2_ref, b2_ref)                   # fc2 + bn2 (folded) + ReLU
    h = layer(h, w3_ref, b3_ref)                   # fc3 + bn3 (folded) + ReLU
    o_ref[...] = layer(h, w4_ref, b4_ref, relu=False)   # fc4 logits


def fused_pool_mlp(xg, kp, *, num_classes, tm=None, single_buffer_weights=True):
    """Pool + fc1..fc4 on window-major gathered embeddings (M, wmax*Lp) -> (M, C)."""
    M, xw = xg.shape
    wmax, lp = kp["pool_w"].shape
    d1, d2 = kp["w1"].shape[1], kp["w2"].shape[1]
    d3, d4 = kp["w3"].shape[1], kp["w4"].shape[1]
    assert xw == wmax * lp

    # Row tiling: one grid step for small batches (no per-step overhead, no
    # 8-row MXU tiles, no host-side row padding); 256-row blocks otherwise
    # (fills the 256x256 MXU on v6e/v7x; pass tm=128 on v5e).
    if tm is None:
        tm = 256
    if M <= tm:
        tm, grid_m, x_in = M, 1, xg                # block == full batch, no pad
    else:
        tm = _round_up(tm, 8)
        mp = _round_up(M, tm)
        grid_m = mp // tm
        x_in = xg if mp == M else jnp.pad(xg, ((0, mp - M), (0, 0)))

    # Grid-invariant operands: single-buffer them (halves resident weight VMEM).
    if single_buffer_weights:
        def const(shape):
            return pl.BlockSpec(shape, lambda i: (0,) * len(shape),
                                pipeline_mode=pl.Buffered(1))
    else:
        def const(shape):
            return pl.BlockSpec(shape, lambda i: (0,) * len(shape))

    weight_keys = ("pool_w", "w1", "b1", "w2", "b2", "w3", "b3", "w4", "b4")
    weight_bytes = sum(int(kp[k].size) * kp[k].dtype.itemsize for k in weight_keys)
    act_bytes = 2 * tm * xw * 2 + 2 * tm * d4 * 4 + tm * (lp + d1 + d2 + d3 + d4) * 4
    vmem_limit = int(min(64 << 20, max(8 << 20, 2 * (weight_bytes + act_bytes))))

    flops = 2 * grid_m * tm * (wmax * lp + lp * d1 + d1 * d2 + d2 * d3 + d3 * d4)
    bytes_accessed = (int(x_in.size) * x_in.dtype.itemsize + weight_bytes
                      + grid_m * tm * d4 * 4)

    out = pl.pallas_call(
        _newsnet_mlp_kernel,
        out_shape=jax.ShapeDtypeStruct((grid_m * tm, d4), jnp.float32),
        grid=(grid_m,),
        in_specs=[
            pl.BlockSpec((tm, xw), lambda i: (i, 0)),   # window-major embeddings
            const((wmax, lp)),                          # pool window weights (f32)
            const((lp, d1)), const((1, d1)),            # fc1 (+bn1 folded)
            const((d1, d2)), const((1, d2)),            # fc2 (+bn2 folded)
            const((d2, d3)), const((1, d3)),            # fc3 (+bn3 folded)
            const((d3, d4)), const((1, d4)),            # fc4
        ],
        out_specs=pl.BlockSpec((tm, d4), lambda i: (i, 0)),
        compiler_params=pltpu.CompilerParams(
            dimension_semantics=("parallel",) if grid_m > 1 else ("arbitrary",),
            vmem_limit_bytes=vmem_limit),
        cost_estimate=pl.CostEstimate(flops=int(flops), transcendentals=0,
                                      bytes_accessed=int(bytes_accessed)),
    )(x_in, *(kp[k] for k in weight_keys))

    return out[:M, :num_classes]


def newsnet_forward(x_idx, emb_table, kp, *, num_classes, tm=None,
                    single_buffer_weights=True):
    # Embedding lookup in bf16 (halves gather HBM traffic), then a second gather
    # that lays the flattened embedding out window-major so the kernel pools
    # with contiguous, lane-aligned slices.
    # TODO(synk): both gathers could move in-kernel (PrefetchScalarGridSpec +
    #   per-row-block DMA gather); left to XLA here.
    n = x_idx.shape[0]
    emb = jnp.take(emb_table, x_idx, axis=0)          # (N, T, D) bf16
    flat = emb.reshape(n, -1)                         # (N, T*D)
    xg = jnp.take(flat, kp["gather_idx"], axis=1)     # (N, wmax * Lp)
    return fused_pool_mlp(xg, kp, num_classes=num_classes, tm=tm,
                          single_buffer_weights=single_buffer_weights)


# ----------------------------------------------------------------------------
# Parameter construction: PyTorch-style init, BN fold, window decomposition.
# ----------------------------------------------------------------------------
def adaptive_pool_windows(l_in, l_out):
    """PyTorch AdaptiveAvgPool1d window (starts, sizes)."""
    starts = [(i * l_in) // l_out for i in range(l_out)]
    ends = [-((-(i + 1) * l_in) // l_out) for i in range(l_out)]   # ceil div
    return starts, [e - s for s, e in zip(starts, ends)]


def init_params(key, *, n_embed, d_embed, hidden_size, num_classes):
    ks = jax.random.split(key, 21)
    h = hidden_size

    def uni(k, shape, fan_in):
        b = 1.0 / np.sqrt(fan_in)
        return jax.random.uniform(k, shape, jnp.float32, -b, b)

    def bn(k1, k2, k3, k4, n):
        return dict(
            gamma=jax.random.uniform(k1, (n,), jnp.float32, 0.5, 1.5),
            beta=0.1 * jax.random.normal(k2, (n,), jnp.float32),
            mean=0.1 * jax.random.normal(k3, (n,), jnp.float32),
            var=jax.random.uniform(k4, (n,), jnp.float32, 0.5, 1.5),
        )

    p = {}
    p["embedding"] = jax.random.normal(ks[0], (n_embed, d_embed), jnp.float32)
    p["fc1_w"] = uni(ks[1], (4 * h, 16 * h), 16 * h)
    p["fc1_b"] = uni(ks[2], (4 * h,), 16 * h)
    p["fc2_w"] = uni(ks[3], (h, 4 * h), 4 * h)
    p["fc2_b"] = uni(ks[4], (h,), 4 * h)
    p["fc3_w"] = uni(ks[5], (84, h), h)
    p["fc3_b"] = uni(ks[6], (84,), h)
    p["fc4_w"] = uni(ks[7], (num_classes, 84), 84)
    p["fc4_b"] = uni(ks[8], (num_classes,), 84)
    p["bn1"] = bn(ks[9], ks[10], ks[11], ks[12], 4 * h)
    p["bn2"] = bn(ks[13], ks[14], ks[15], ks[16], h)
    p["bn3"] = bn(ks[17], ks[18], ks[19], ks[20], 84)
    return p


def build_kernel_params(params, *, context_size, d_embed, hidden_size,
                        num_classes, eps=1e-5):
    """Fold eval-mode BN into the linears, pad dims to 128, build window-major
    gather indices + f32 pooling weights (no dense pool matrix)."""
    h = hidden_size
    l_in = context_size * d_embed
    l_out = 16 * h
    lp = _round_up(l_out, 128)
    d1 = _round_up(4 * h, 128)
    d2 = _round_up(h, 128)
    d3 = _round_up(84, 128)
    d4 = _round_up(num_classes, 128)

    starts, sizes = adaptive_pool_windows(l_in, l_out)
    wmax = max(sizes)
    gidx = np.zeros((wmax, lp), np.int32)       # pad slots/columns -> index 0
    pw = np.zeros((wmax, lp), np.float32)       # pad slots/columns -> weight 0
    for i in range(l_out):
        for j in range(sizes[i]):
            gidx[j, i] = starts[i] + j
            pw[j, i] = 1.0 / sizes[i]

    f = lambda a: np.asarray(a, dtype=np.float64)

    def fold(w, b, bn, in_pad, out_pad):
        w, b = f(w), f(b)
        s = f(bn["gamma"]) / np.sqrt(f(bn["var"]) + eps)
        wf = w.T * s[None, :]                         # (in, out)
        bf = (b - f(bn["mean"])) * s + f(bn["beta"])
        W = np.zeros((in_pad, out_pad)); W[:wf.shape[0], :wf.shape[1]] = wf
        B = np.zeros((1, out_pad));      B[0, :bf.shape[0]] = bf
        return W, B

    W1, B1 = fold(params["fc1_w"], params["fc1_b"], params["bn1"], lp, d1)
    W2, B2 = fold(params["fc2_w"], params["fc2_b"], params["bn2"], d1, d2)
    W3, B3 = fold(params["fc3_w"], params["fc3_b"], params["bn3"], d2, d3)
    w4, b4 = f(params["fc4_w"]), f(params["fc4_b"])
    W4 = np.zeros((d3, d4)); W4[:w4.shape[1], :w4.shape[0]] = w4.T
    B4 = np.zeros((1, d4));  B4[0, :b4.shape[0]] = b4

    bf16 = jnp.bfloat16
    return {
        "gather_idx": jnp.asarray(gidx.reshape(-1), jnp.int32),
        "pool_w": jnp.asarray(pw, jnp.float32),
        "w1": jnp.asarray(W1, bf16), "b1": jnp.asarray(B1, jnp.float32),
        "w2": jnp.asarray(W2, bf16), "b2": jnp.asarray(B2, jnp.float32),
        "w3": jnp.asarray(W3, bf16), "b3": jnp.asarray(B3, jnp.float32),
        "w4": jnp.asarray(W4, bf16), "b4": jnp.asarray(B4, jnp.float32),
    }


# ----------------------------------------------------------------------------
# Independent NumPy (float64) reference for correctness checking.
# ----------------------------------------------------------------------------
def newsnet_reference(x_idx, params, *, hidden_size, eps=1e-5):
    f = lambda a: np.asarray(a, dtype=np.float64)
    table = f(params["embedding"])
    emb = table[np.asarray(x_idx)]                    # (N, T, D)
    N = emb.shape[0]
    flat = emb.reshape(N, -1)
    l_in, l_out = flat.shape[1], 16 * hidden_size

    pooled = np.zeros((N, l_out))
    for i in range(l_out):
        s = (i * l_in) // l_out
        e = -((-(i + 1) * l_in) // l_out)
        pooled[:, i] = flat[:, s:e].mean(axis=1)

    def bn(y, d):
        return ((y - f(d["mean"])) / np.sqrt(f(d["var"]) + eps)
                * f(d["gamma"]) + f(d["beta"]))

    h = pooled
    h = np.maximum(bn(h @ f(params["fc1_w"]).T + f(params["fc1_b"]), params["bn1"]), 0.0)
    h = np.maximum(bn(h @ f(params["fc2_w"]).T + f(params["fc2_b"]), params["bn2"]), 0.0)
    h = np.maximum(bn(h @ f(params["fc3_w"]).T + f(params["fc3_b"]), params["bn3"]), 0.0)
    return h @ f(params["fc4_w"]).T + f(params["fc4_b"])


if __name__ == "__main__":
    # Small shapes consistent with NewsNet's forward:
    #   vocab=200, d_embed=64, context=26 -> l_in=1664; hidden=32 -> l_out=512
    #   (ragged 3.25:1 adaptive-pool windows), num_classes=6, batch=16.
    VOCAB, D_EMBED, CONTEXT = 200, 64, 26
    HIDDEN, NUM_CLASSES = 32, 6
    BATCH = 16

    key = jax.random.PRNGKey(0)
    kx, kw = jax.random.split(key)

    x_idx = jax.random.randint(kx, (BATCH, CONTEXT), 0, VOCAB, dtype=jnp.int32)
    params = init_params(kw, n_embed=VOCAB, d_embed=D_EMBED,
                         hidden_size=HIDDEN, num_classes=NUM_CLASSES)
    kparams = build_kernel_params(params, context_size=CONTEXT, d_embed=D_EMBED,
                                  hidden_size=HIDDEN, num_classes=NUM_CLASSES)
    emb_bf16 = params["embedding"].astype(jnp.bfloat16)   # gather in bf16

    fwd = jax.jit(functools.partial(newsnet_forward, num_classes=NUM_CLASSES))
    try:
        out = jax.block_until_ready(fwd(x_idx, emb_bf16, kparams))
    except Exception:
        # TODO(synk): jax versions without pl.Buffered(1) support fall back to
        #   default double-buffered weight BlockSpecs (numerics unchanged).
        fwd = jax.jit(functools.partial(newsnet_forward, num_classes=NUM_CLASSES,
                                        single_buffer_weights=False))
        out = jax.block_until_ready(fwd(x_idx, emb_bf16, kparams))

    ref = newsnet_reference(np.asarray(x_idx), params, hidden_size=HIDDEN)
    np.testing.assert_allclose(np.asarray(out), ref.astype(np.float32),
                               rtol=2e-2, atol=2e-2)
    print("KERNEL_OK")
</pallas_src>

<mosaic_0001>
module attributes {stable_mosaic.version = 11 : i64} {
  func.func @_newsnet_mlp_kernel(%arg0: i32, %arg1: memref<16x2048xbf16, #tpu.memory_space<vmem>>, %arg2: memref<4x512xf32, #tpu.memory_space<vmem>>, %arg3: memref<512x128xbf16, #tpu.memory_space<vmem>>, %arg4: memref<1x128xf32, #tpu.memory_space<vmem>>, %arg5: memref<128x128xbf16, #tpu.memory_space<vmem>>, %arg6: memref<1x128xf32, #tpu.memory_space<vmem>>, %arg7: memref<128x128xbf16, #tpu.memory_space<vmem>>, %arg8: memref<1x128xf32, #tpu.memory_space<vmem>>, %arg9: memref<128x128xbf16, #tpu.memory_space<vmem>>, %arg10: memref<1x128xf32, #tpu.memory_space<vmem>>, %arg11: memref<16x128xf32, #tpu.memory_space<vmem>>) attributes {dimension_semantics = [#tpu.dimension_semantics<arbitrary>], iteration_bounds = array<i64: 1>, scalar_prefetch = 0 : i64, scratch_operands = 0 : i64, tpu.core_type = #tpu.core_type<tc>, window_params = [{transform_indices = @transform_0, window_bounds = array<i64: 16, 2048>}, {pipeline_mode = #tpu.pipeline_mode<synchronous>, transform_indices = @transform_1, window_bounds = array<i64: 4, 512>}, {pipeline_mode = #tpu.pipeline_mode<synchronous>, transform_indices = @transform_2, window_bounds = array<i64: 512, 128>}, {pipeline_mode = #tpu.pipeline_mode<synchronous>, transform_indices = @transform_3, window_bounds = array<i64: 1, 128>}, {pipeline_mode = #tpu.pipeline_mode<synchronous>, transform_indices = @transform_4, window_bounds = array<i64: 128, 128>}, {pipeline_mode = #tpu.pipeline_mode<synchronous>, transform_indices = @transform_5, window_bounds = array<i64: 1, 128>}, {pipeline_mode = #tpu.pipeline_mode<synchronous>, transform_indices = @transform_6, window_bounds = array<i64: 128, 128>}, {pipeline_mode = #tpu.pipeline_mode<synchronous>, transform_indices = @transform_7, window_bounds = array<i64: 1, 128>}, {pipeline_mode = #tpu.pipeline_mode<synchronous>, transform_indices = @transform_8, window_bounds = array<i64: 128, 128>}, {pipeline_mode = #tpu.pipeline_mode<synchronous>, transform_indices = @transform_9, window_bounds = array<i64: 1, 128>}, {transform_indices = @transform_10, window_bounds = array<i64: 16, 128>}]} {
    %c0 = arith.constant 0 : index
    %c0_0 = arith.constant 0 : index
    %0 = vector.load %arg2[%c0, %c0_0] : memref<4x512xf32, #tpu.memory_space<vmem>>, vector<4x512xf32>
    %c0_1 = arith.constant 0 : index
    %c0_2 = arith.constant 0 : index
    %1 = vector.load %arg1[%c0_1, %c0_2] : memref<16x2048xbf16, #tpu.memory_space<vmem>>, vector<16x512xbf16>
    %2 = arith.extf %1 : vector<16x512xbf16> to vector<16x512xf32>
    %3 = vector.extract_strided_slice %0 {offsets = [0, 0], sizes = [1, 512], strides = [1, 1]} : vector<4x512xf32> to vector<1x512xf32>
    %4 = vector.broadcast %3 : vector<1x512xf32> to vector<16x512xf32>
    %5 = arith.mulf %2, %4 : vector<16x512xf32>
    %c0_3 = arith.constant 0 : index
    %c512 = arith.constant 512 : index
    %6 = vector.load %arg1[%c0_3, %c512] : memref<16x2048xbf16, #tpu.memory_space<vmem>>, vector<16x512xbf16>
    %7 = arith.extf %6 : vector<16x512xbf16> to vector<16x512xf32>
    %8 = vector.extract_strided_slice %0 {offsets = [1, 0], sizes = [1, 512], strides = [1, 1]} : vector<4x512xf32> to vector<1x512xf32>
    %9 = vector.broadcast %8 : vector<1x512xf32> to vector<16x512xf32>
    %10 = arith.mulf %7, %9 : vector<16x512xf32>
    %11 = arith.addf %5, %10 : vector<16x512xf32>
    %c0_4 = arith.constant 0 : index
    %c1024 = arith.constant 1024 : index
    %12 = vector.load %arg1[%c0_4, %c1024] : memref<16x2048xbf16, #tpu.memory_space<vmem>>, vector<16x512xbf16>
    %13 = arith.extf %12 : vector<16x512xbf16> to vector<16x512xf32>
    %14 = vector.extract_strided_slice %0 {offsets = [2, 0], sizes = [1, 512], strides = [1, 1]} : vector<4x512xf32> to vector<1x512xf32>
    %15 = vector.broadcast %14 : vector<1x512xf32> to vector<16x512xf32>
    %16 = arith.mulf %13, %15 : vector<16x512xf32>
    %17 = arith.addf %11, %16 : vector<16x512xf32>
    %c0_5 = arith.constant 0 : index
    %c1536 = arith.constant 1536 : index
    %18 = vector.load %arg1[%c0_5, %c1536] : memref<16x2048xbf16, #tpu.memory_space<vmem>>, vector<16x512xbf16>
    %19 = arith.extf %18 : vector<16x512xbf16> to vector<16x512xf32>
    %20 = vector.extract_strided_slice %0 {offsets = [3, 0], sizes = [1, 512], strides = [1, 1]} : vector<4x512xf32> to vector<1x512xf32>
    %21 = vector.broadcast %20 : vector<1x512xf32> to vector<16x512xf32>
    %22 = arith.mulf %19, %21 : vector<16x512xf32>
    %23 = arith.addf %17, %22 : vector<16x512xf32>
    %24 = arith.truncf %23 : vector<16x512xf32> to vector<16x512xbf16>
    %c0_6 = arith.constant 0 : index
    %c0_7 = arith.constant 0 : index
    %25 = vector.load %arg3[%c0_6, %c0_7] : memref<512x128xbf16, #tpu.memory_space<vmem>>, vector<512x128xbf16>
    %cst = arith.constant dense<0.000000e+00> : vector<16x128xf32>
    %26 = tpu.matmul %24, %25, %cst {dimension_numbers = #tpu.dot_dimension_numbers<[1], [0], [0], [1], [0, 0, 1, 1], [], []>} : vector<16x512xbf16>, vector<512x128xbf16>, vector<16x128xf32> -> vector<16x128xf32>
    %c0_8 = arith.constant 0 : index
    %c0_9 = arith.constant 0 : index
    %27 = vector.load %arg4[%c0_8, %c0_9] : memref<1x128xf32, #tpu.memory_space<vmem>>, vector<1x128xf32>
    %28 = vector.broadcast %27 : vector<1x128xf32> to vector<16x128xf32>
    %29 = arith.addf %26, %28 : vector<16x128xf32>
    %cst_10 = arith.constant 0.000000e+00 : f32
    %30 = vector.broadcast %cst_10 : f32 to vector<16x128xf32>
    %31 = arith.maximumf %29, %30 : vector<16x128xf32>
    %32 = arith.truncf %31 : vector<16x128xf32> to vector<16x128xbf16>
    %c0_11 = arith.constant 0 : index
    %c0_12 = arith.constant 0 : index
    %33 = vector.load %arg5[%c0_11, %c0_12] : memref<128x128xbf16, #tpu.memory_space<vmem>>, vector<128x128xbf16>
    %cst_13 = arith.constant dense<0.000000e+00> : vector<16x128xf32>
    %34 = tpu.matmul %32, %33, %cst_13 {dimension_numbers = #tpu.dot_dimension_numbers<[1], [0], [0], [1], [0, 0, 1, 1], [], []>} : vector<16x128xbf16>, vector<128x128xbf16>, vector<16x128xf32> -> vector<16x128xf32>
    %c0_14 = arith.constant 0 : index
    %c0_15 = arith.constant 0 : index
    %35 = vector.load %arg6[%c0_14, %c0_15] : memref<1x128xf32, #tpu.memory_space<vmem>>, vector<1x128xf32>
    %36 = vector.broadcast %35 : vector<1x128xf32> to vector<16x128xf32>
    %37 = arith.addf %34, %36 : vector<16x128xf32>
    %cst_16 = arith.constant 0.000000e+00 : f32
    %38 = vector.broadcast %cst_16 : f32 to vector<16x128xf32>
    %39 = arith.maximumf %37, %38 : vector<16x128xf32>
    %40 = arith.truncf %39 : vector<16x128xf32> to vector<16x128xbf16>
    %c0_17 = arith.constant 0 : index
    %c0_18 = arith.constant 0 : index
    %41 = vector.load %arg7[%c0_17, %c0_18] : memref<128x128xbf16, #tpu.memory_space<vmem>>, vector<128x128xbf16>
    %cst_19 = arith.constant dense<0.000000e+00> : vector<16x128xf32>
    %42 = tpu.matmul %40, %41, %cst_19 {dimension_numbers = #tpu.dot_dimension_numbers<[1], [0], [0], [1], [0, 0, 1, 1], [], []>} : vector<16x128xbf16>, vector<128x128xbf16>, vector<16x128xf32> -> vector<16x128xf32>
    %c0_20 = arith.constant 0 : index
    %c0_21 = arith.constant 0 : index
    %43 = vector.load %arg8[%c0_20, %c0_21] : memref<1x128xf32, #tpu.memory_space<vmem>>, vector<1x128xf32>
    %44 = vector.broadcast %43 : vector<1x128xf32> to vector<16x128xf32>
    %45 = arith.addf %42, %44 : vector<16x128xf32>
    %cst_22 = arith.constant 0.000000e+00 : f32
    %46 = vector.broadcast %cst_22 : f32 to vector<16x128xf32>
    %47 = arith.maximumf %45, %46 : vector<16x128xf32>
    %48 = arith.truncf %47 : vector<16x128xf32> to vector<16x128xbf16>
    %c0_23 = arith.constant 0 : index
    %c0_24 = arith.constant 0 : index
    %49 = vector.load %arg9[%c0_23, %c0_24] : memref<128x128xbf16, #tpu.memory_space<vmem>>, vector<128x128xbf16>
    %cst_25 = arith.constant dense<0.000000e+00> : vector<16x128xf32>
    %50 = tpu.matmul %48, %49, %cst_25 {dimension_numbers = #tpu.dot_dimension_numbers<[1], [0], [0], [1], [0, 0, 1, 1], [], []>} : vector<16x128xbf16>, vector<128x128xbf16>, vector<16x128xf32> -> vector<16x128xf32>
    %c0_26 = arith.constant 0 : index
    %c0_27 = arith.constant 0 : index
    %51 = vector.load %arg10[%c0_26, %c0_27] : memref<1x128xf32, #tpu.memory_space<vmem>>, vector<1x128xf32>
    %52 = vector.broadcast %51 : vector<1x128xf32> to vector<16x128xf32>
    %53 = arith.addf %50, %52 : vector<16x128xf32>
    %c0_28 = arith.constant 0 : index
    %c0_29 = arith.constant 0 : index
    %54 = vector.load %arg11[%c0_28, %c0_29] : memref<16x128xf32, #tpu.memory_space<vmem>>, vector<16x128xf32>
    tpu.vector_store %arg11[%c0_28, %c0_29], %53 {strides = array<i32>} : memref<16x128xf32, #tpu.memory_space<vmem>>, vector<16x128xf32>,
    return
  }
  func.func @transform_0(%arg0: i32) -> (i32, i32) {
    %c0_i32 = arith.constant 0 : i32
    %c0_i32_0 = arith.constant 0 : i32
    return %arg0, %c0_i32 : i32, i32
  }
  func.func @transform_1(%arg0: i32) -> (i32, i32) {
    %c0_i32 = arith.constant 0 : i32
    %c0_i32_0 = arith.constant 0 : i32
    %c0_i32_1 = arith.constant 0 : i32
    return %c0_i32, %c0_i32_0 : i32, i32
  }
  func.func @transform_2(%arg0: i32) -> (i32, i32) {
    %c0_i32 = arith.constant 0 : i32
    %c0_i32_0 = arith.constant 0 : i32
    %c0_i32_1 = arith.constant 0 : i32
    return %c0_i32, %c0_i32_0 : i32, i32
  }
  func.func @transform_3(%arg0: i32) -> (i32, i32) {
    %c0_i32 = arith.constant 0 : i32
    %c0_i32_0 = arith.constant 0 : i32
    %c0_i32_1 = arith.constant 0 : i32
    return %c0_i32, %c0_i32_0 : i32, i32
  }
  func.func @transform_4(%arg0: i32) -> (i32, i32) {
    %c0_i32 = arith.constant 0 : i32
    %c0_i32_0 = arith.constant 0 : i32
    %c0_i32_1 = arith.constant 0 : i32
    return %c0_i32, %c0_i32_0 : i32, i32
  }
  func.func @transform_5(%arg0: i32) -> (i32, i32) {
    %c0_i32 = arith.constant 0 : i32
    %c0_i32_0 = arith.constant 0 : i32
    %c0_i32_1 = arith.constant 0 : i32
    return %c0_i32, %c0_i32_0 : i32, i32
  }
  func.func @transform_6(%arg0: i32) -> (i32, i32) {
    %c0_i32 = arith.constant 0 : i32
    %c0_i32_0 = arith.constant 0 : i32
    %c0_i32_1 = arith.constant 0 : i32
    return %c0_i32, %c0_i32_0 : i32, i32
  }
  func.func @transform_7(%arg0: i32) -> (i32, i32) {
    %c0_i32 = arith.constant 0 : i32
    %c0_i32_0 = arith.constant 0 : i32
    %c0_i32_1 = arith.constant 0 : i32
    return %c0_i32, %c0_i32_0 : i32, i32
  }
  func.func @transform_8(%arg0: i32) -> (i32, i32) {
    %c0_i32 = arith.constant 0 : i32
    %c0_i32_0 = arith.constant 0 : i32
    %c0_i32_1 = arith.constant 0 : i32
    return %c0_i32, %c0_i32_0 : i32, i32
  }
  func.func @transform_9(%arg0: i32) -> (i32, i32) {
    %c0_i32 = arith.constant 0 : i32
    %c0_i32_0 = arith.constant 0 : i32
    %c0_i32_1 = arith.constant 0 : i32
    return %c0_i32, %c0_i32_0 : i32, i32
  }
  func.func @transform_10(%arg0: i32) -> (i32, i32) {
    %c0_i32 = arith.constant 0 : i32
    %c0_i32_0 = arith.constant 0 : i32
    return %arg0, %c0_i32 : i32, i32
  }
}

module attributes {stable_mosaic.version = 11 : i64} {
  func.func @_newsnet_mlp_kernel(%arg0: i32, %arg1: memref<16x2048xbf16, #tpu.memory_space<vmem>>, %arg2: memref<4x512xf32, #tpu.memory_space<vmem>>, %arg3: memref<512x128xbf16, #tpu.memory_space<vmem>>, %arg4: memref<1x128xf32, #tpu.memory_space<vmem>>, %arg5: memref<128x128xbf16, #tpu.memory_space<vmem>>, %arg6: memref<1x128xf32, #tpu.memory_space<vmem>>, %arg7: memref<128x128xbf16, #tpu.memory_space<vmem>>, %arg8: memref<1x128xf32, #tpu.memory_space<vmem>>, %arg9: memref<128x128xbf16, #tpu.memory_space<vmem>>, %arg10: memref<1x128xf32, #tpu.memory_space<vmem>>, %arg11: memref<16x128xf32, #tpu.memory_space<vmem>>) attributes {dimension_semantics = [#tpu.dimension_semantics<arbitrary>], iteration_bounds = array<i64: 1>, scalar_prefetch = 0 : i64, scratch_operands = 0 : i64, tpu.core_type = #tpu.core_type<tc>, window_params = [{transform_indices = @transform_0, window_bounds = array<i64: 16, 2048>}, {pipeline_mode = #tpu.pipeline_mode<synchronous>, transform_indices = @transform_1, window_bounds = array<i64: 4, 512>}, {pipeline_mode = #tpu.pipeline_mode<synchronous>, transform_indices = @transform_2, window_bounds = array<i64: 512, 128>}, {pipeline_mode = #tpu.pipeline_mode<synchronous>, transform_indices = @transform_3, window_bounds = array<i64: 1, 128>}, {pipeline_mode = #tpu.pipeline_mode<synchronous>, transform_indices = @transform_4, window_bounds = array<i64: 128, 128>}, {pipeline_mode = #tpu.pipeline_mode<synchronous>, transform_indices = @transform_5, window_bounds = array<i64: 1, 128>}, {pipeline_mode = #tpu.pipeline_mode<synchronous>, transform_indices = @transform_6, window_bounds = array<i64: 128, 128>}, {pipeline_mode = #tpu.pipeline_mode<synchronous>, transform_indices = @transform_7, window_bounds = array<i64: 1, 128>}, {pipeline_mode = #tpu.pipeline_mode<synchronous>, transform_indices = @transform_8, window_bounds = array<i64: 128, 128>}, {pipeline_mode = #tpu.pipeline_mode<synchronous>, transform_indices = @transform_9, window_bounds = array<i64: 1, 128>}, {transform_indices = @transform_10, window_bounds = array<i64: 16, 128>}]} {
    %c0 = arith.constant 0 : index
    %c0_0 = arith.constant 0 : index
    %0 = vector.load %arg2[%c0, %c0_0] : memref<4x512xf32, #tpu.memory_space<vmem>>, vector<4x512xf32>
    %c0_1 = arith.constant 0 : index
    %c0_2 = arith.constant 0 : index
    %1 = vector.load %arg1[%c0_1, %c0_2] : memref<16x2048xbf16, #tpu.memory_space<vmem>>, vector<16x512xbf16>
    %2 = arith.extf %1 : vector<16x512xbf16> to vector<16x512xf32>
    %3 = vector.extract_strided_slice %0 {offsets = [0, 0], sizes = [1, 512], strides = [1, 1]} : vector<4x512xf32> to vector<1x512xf32>
    %4 = vector.broadcast %3 : vector<1x512xf32> to vector<16x512xf32>
    %5 = arith.mulf %2, %4 : vector<16x512xf32>
    %c0_3 = arith.constant 0 : index
    %c512 = arith.constant 512 : index
    %6 = vector.load %arg1[%c0_3, %c512] : memref<16x2048xbf16, #tpu.memory_space<vmem>>, vector<16x512xbf16>
    %7 = arith.extf %6 : vector<16x512xbf16> to vector<16x512xf32>
    %8 = vector.extract_strided_slice %0 {offsets = [1, 0], sizes = [1, 512], strides = [1, 1]} : vector<4x512xf32> to vector<1x512xf32>
    %9 = vector.broadcast %8 : vector<1x512xf32> to vector<16x512xf32>
    %10 = arith.mulf %7, %9 : vector<16x512xf32>
    %11 = arith.addf %5, %10 : vector<16x512xf32>
    %c0_4 = arith.constant 0 : index
    %c1024 = arith.constant 1024 : index
    %12 = vector.load %arg1[%c0_4, %c1024] : memref<16x2048xbf16, #tpu.memory_space<vmem>>, vector<16x512xbf16>
    %13 = arith.extf %12 : vector<16x512xbf16> to vector<16x512xf32>
    %14 = vector.extract_strided_slice %0 {offsets = [2, 0], sizes = [1, 512], strides = [1, 1]} : vector<4x512xf32> to vector<1x512xf32>
    %15 = vector.broadcast %14 : vector<1x512xf32> to vector<16x512xf32>
    %16 = arith.mulf %13, %15 : vector<16x512xf32>
    %17 = arith.addf %11, %16 : vector<16x512xf32>
    %c0_5 = arith.constant 0 : index
    %c1536 = arith.constant 1536 : index
    %18 = vector.load %arg1[%c0_5, %c1536] : memref<16x2048xbf16, #tpu.memory_space<vmem>>, vector<16x512xbf16>
    %19 = arith.extf %18 : vector<16x512xbf16> to vector<16x512xf32>
    %20 = vector.extract_strided_slice %0 {offsets = [3, 0], sizes = [1, 512], strides = [1, 1]} : vector<4x512xf32> to vector<1x512xf32>
    %21 = vector.broadcast %20 : vector<1x512xf32> to vector<16x512xf32>
    %22 = arith.mulf %19, %21 : vector<16x512xf32>
    %23 = arith.addf %17, %22 : vector<16x512xf32>
    %24 = arith.truncf %23 : vector<16x512xf32> to vector<16x512xbf16>
    %c0_6 = arith.constant 0 : index
    %c0_7 = arith.constant 0 : index
    %25 = vector.load %arg3[%c0_6, %c0_7] : memref<512x128xbf16, #tpu.memory_space<vmem>>, vector<512x128xbf16>
    %cst = arith.constant dense<0.000000e+00> : vector<16x128xf32>
    %26 = tpu.matmul %24, %25, %cst {dimension_numbers = #tpu.dot_dimension_numbers<[1], [0], [0], [1], [0, 0, 1, 1], [], []>} : vector<16x512xbf16>, vector<512x128xbf16>, vector<16x128xf32> -> vector<16x128xf32>
    %c0_8 = arith.constant 0 : index
    %c0_9 = arith.constant 0 : index
    %27 = vector.load %arg4[%c0_8, %c0_9] : memref<1x128xf32, #tpu.memory_space<vmem>>, vector<1x128xf32>
    %28 = vector.broadcast %27 : vector<1x128xf32> to vector<16x128xf32>
    %29 = arith.addf %26, %28 : vector<16x128xf32>
    %cst_10 = arith.constant 0.000000e+00 : f32
    %30 = vector.broadcast %cst_10 : f32 to vector<16x128xf32>
    %31 = arith.maximumf %29, %30 : vector<16x128xf32>
    %32 = arith.truncf %31 : vector<16x128xf32> to vector<16x128xbf16>
    %c0_11 = arith.constant 0 : index
    %c0_12 = arith.constant 0 : index
    %33 = vector.load %arg5[%c0_11, %c0_12] : memref<128x128xbf16, #tpu.memory_space<vmem>>, vector<128x128xbf16>
    %cst_13 = arith.constant dense<0.000000e+00> : vector<16x128xf32>
    %34 = tpu.matmul %32, %33, %cst_13 {dimension_numbers = #tpu.dot_dimension_numbers<[1], [0], [0], [1], [0, 0, 1, 1], [], []>} : vector<16x128xbf16>, vector<128x128xbf16>, vector<16x128xf32> -> vector<16x128xf32>
    %c0_14 = arith.constant 0 : index
    %c0_15 = arith.constant 0 : index
    %35 = vector.load %arg6[%c0_14, %c0_15] : memref<1x128xf32, #tpu.memory_space<vmem>>, vector<1x128xf32>
    %36 = vector.broadcast %35 : vector<1x128xf32> to vector<16x128xf32>
    %37 = arith.addf %34, %36 : vector<16x128xf32>
    %cst_16 = arith.constant 0.000000e+00 : f32
    %38 = vector.broadcast %cst_16 : f32 to vector<16x128xf32>
    %39 = arith.maximumf %37, %38 : vector<16x128xf32>
    %40 = arith.truncf %39 : vector<16x128xf32> to vector<16x128xbf16>
    %c0_17 = arith.constant 0 : index
    %c0_18 = arith.constant 0 : index
    %41 = vector.load %arg7[%c0_17, %c0_18] : memref<128x128xbf16, #tpu.memory_space<vmem>>, vector<128x128xbf16>
    %cst_19 = arith.constant dense<0.000000e+00> : vector<16x128xf32>
    %42 = tpu.matmul %40, %41, %cst_19 {dimension_numbers = #tpu.dot_dimension_numbers<[1], [0], [0], [1], [0, 0, 1, 1], [], []>} : vector<16x128xbf16>, vector<128x128xbf16>, vector<16x128xf32> -> vector<16x128xf32>
    %c0_20 = arith.constant 0 : index
    %c0_21 = arith.constant 0 : index
    %43 = vector.load %arg8[%c0_20, %c0_21] : memref<1x128xf32, #tpu.memory_space<vmem>>, vector<1x128xf32>
    %44 = vector.broadcast %43 : vector<1x128xf32> to vector<16x128xf32>
    %45 = arith.addf %42, %44 : vector<16x128xf32>
    %cst_22 = arith.constant 0.000000e+00 : f32
    %46 = vector.broadcast %cst_22 : f32 to vector<16x128xf32>
    %47 = arith.maximumf %45, %46 : vector<16x128xf32>
    %48 = arith.truncf %47 : vector<16x128xf32> to vector<16x128xbf16>
    %c0_23 = arith.constant 0 : index
    %c0_24 = arith.constant 0 : index
    %49 = vector.load %arg9[%c0_23, %c0_24] : memref<128x128xbf16, #tpu.memory_space<vmem>>, vector<128x128xbf16>
    %cst_25 = arith.constant dense<0.000000e+00> : vector<16x128xf32>
    %50 = tpu.matmul %48, %49, %cst_25 {dimension_numbers = #tpu.dot_dimension_numbers<[1], [0], [0], [1], [0, 0, 1, 1], [], []>} : vector<16x128xbf16>, vector<128x128xbf16>, vector<16x128xf32> -> vector<16x128xf32>
    %c0_26 = arith.constant 0 : index
    %c0_27 = arith.constant 0 : index
    %51 = vector.load %arg10[%c0_26, %c0_27] : memref<1x128xf32, #tpu.memory_space<vmem>>, vector<1x128xf32>
    %52 = vector.broadcast %51 : vector<1x128xf32> to vector<16x128xf32>
    %53 = arith.addf %50, %52 : vector<16x128xf32>
    %c0_28 = arith.constant 0 : index
    %c0_29 = arith.constant 0 : index
    %54 = vector.load %arg11[%c0_28, %c0_29] : memref<16x128xf32, #tpu.memory_space<vmem>>, vector<16x128xf32>
    tpu.vector_store %arg11[%c0_28, %c0_29], %53 {strides = array<i32>} : memref<16x128xf32, #tpu.memory_space<vmem>>, vector<16x128xf32>,
    return
  }
  func.func @transform_0(%arg0: i32) -> (i32, i32) {
    %c0_i32 = arith.constant 0 : i32
    %c0_i32_0 = arith.constant 0 : i32
    return %arg0, %c0_i32 : i32, i32
  }
  func.func @transform_1(%arg0: i32) -> (i32, i32) {
    %c0_i32 = arith.constant 0 : i32
    %c0_i32_0 = arith.constant 0 : i32
    %c0_i32_1 = arith.constant 0 : i32
    return %c0_i32, %c0_i32_0 : i32, i32
  }
  func.func @transform_2(%arg0: i32) -> (i32, i32) {
    %c0_i32 = arith.constant 0 : i32
    %c0_i32_0 = arith.constant 0 : i32
    %c0_i32_1 = arith.constant 0 : i32
    return %c0_i32, %c0_i32_0 : i32, i32
  }
  func.func @transform_3(%arg0: i32) -> (i32, i32) {
    %c0_i32 = arith.constant 0 : i32
    %c0_i32_0 = arith.constant 0 : i32
    %c0_i32_1 = arith.constant 0 : i32
    return %c0_i32, %c0_i32_0 : i32, i32
  }
  func.func @transform_4(%arg0: i32) -> (i32, i32) {
    %c0_i32 = arith.constant 0 : i32
    %c0_i32_0 = arith.constant 0 : i32
    %c0_i32_1 = arith.constant 0 : i32
    return %c0_i32, %c0_i32_0 : i32, i32
  }
  func.func @transform_5(%arg0: i32) -> (i32, i32) {
    %c0_i32 = arith.constant 0 : i32
    %c0_i32_0 = arith.constant 0 : i32
    %c0_i32_1 = arith.constant 0 : i32
    return %c0_i32, %c0_i32_0 : i32, i32
  }
  func.func @transform_6(%arg0: i32) -> (i32, i32) {
    %c0_i32 = arith.constant 0 : i32
    %c0_i32_0 = arith.constant 0 : i32
    %c0_i32_1 = arith.constant 0 : i32
    return %c0_i32, %c0_i32_0 : i32, i32
  }
  func.func @transform_7(%arg0: i32) -> (i32, i32) {
    %c0_i32 = arith.constant 0 : i32
    %c0_i32_0 = arith.constant 0 : i32
    %c0_i32_1 = arith.constant 0 : i32
    return %c0_i32, %c0_i32_0 : i32, i32
  }
  func.func @transform_8(%arg0: i32) -> (i32, i32) {
    %c0_i32 = arith.constant 0 : i32
    %c0_i32_0 = arith.constant 0 : i32
    %c0_i32_1 = arith.constant 0 : i32
    return %c0_i32, %c0_i32_0 : i32, i32
  }
  func.func @transform_9(%arg0: i32) -> (i32, i32) {
    %c0_i32 = arith.constant 0 : i32
    %c0_i32_0 = arith.constant 0 : i32
    %c0_i32_1 = arith.constant 0 : i32
    return %c0_i32, %c0_i32_0 : i32, i32
  }
  func.func @transform_10(%arg0: i32) -> (i32, i32) {
    %c0_i32 = arith.constant 0 : i32
    %c0_i32_0 = arith.constant 0 : i32
    return %arg0, %c0_i32 : i32, i32
  }
}

</mosaic_0001>

<bundles_post_ra>
// kernel: newsnet_forward.1
= control target key start
LH: loop header
LB: loop body
LE: loop exit
PB: predicated region body
PF: predicated region fallthrough
CT: control target
= control target key end

     0   :  { %v52_v21 = vlaneseq  ;;  %v1237_v51 = vmov 0.0   ;;  %vm1238_vm0 = vmmov 0   ;;  %s1732_s2 = inlined_call_operand.vmem [shape: bf16[512,128], index: 2, kind: input, shape index: {}]   ;;  %s1733_s0 = inlined_call_operand.vmem [shape: bf16[16,2048], index: 0, kind: input, shape index: {}]   ;;  %s1734_s1 = inlined_call_operand.vmem [shape: f32[4,512], index: 1, kind: input, shape index: {}]   ;;  %s1735_s4 = inlined_call_operand.vmem [shape: bf16[128,128], index: 4, kind: input, shape index: {}]   ;;  %s1736_s6 = inlined_call_operand.vmem [shape: bf16[128,128], index: 6, kind: input, shape index: {}]   ;;  %s1737_s3 = inlined_call_operand.vmem [shape: f32[1,128], index: 3, kind: input, shape index: {}]   ;;  %s1738_s8 = inlined_call_operand.vmem [shape: bf16[128,128], index: 8, kind: input, shape index: {}]   ;;  %s1739_s5 = inlined_call_operand.vmem [shape: f32[1,128], index: 5, kind: input, shape index: {}]   ;;  %s1740_s7 = inlined_call_operand.vmem [shape: f32[1,128], index: 7, kind: input, shape index: {}]   ;;  %s1741_s9 = inlined_call_operand.vmem [shape: f32[1,128], index: 9, kind: input, shape index: {}]   ;;  %s1742_s10 = inlined_call_operand.vmem [shape: f32[16,128], index: 10, kind: output, shape index: {}]  }
   0x1   :  { %v1181_v0 = vld [vmem:[%s1732_s2 + $0x40] sm:$0xff]   ;;  %v1185_v4 = vld [vmem:[%s1732_s2 + $0x48] sm:$0xff]   ;;  %v1189_v8 = vld [vmem:[%s1732_s2 + $0x50] sm:$0xff]  }
   0x2   :  { %v1182_v1 = vld [vmem:[%s1732_s2 + $0xc0] sm:$0xff]   ;;  %1048 = vmatprep.subr.bf16.mxu0 %v1181_v0  ;;  %v1186_v5 = vld [vmem:[%s1732_s2 + $0xc8] sm:$0xff]   ;;  %v1190_v9 = vld [vmem:[%s1732_s2 + $0xd0] sm:$0xff]   ;;  %v1369_v26 = vshrl.u32 %v52_v21, 7 }
   0x3   :  { %v1183_v2 = vld [vmem:[%s1732_s2] sm:$0xff]   ;;  %1070 = vmatprep.subr.bf16.mxu1 %v1182_v1  ;;  %v1187_v6 = vld [vmem:[%s1732_s2 + $0x8] sm:$0xff]   ;;  %v1191_v10 = vld [vmem:[%s1732_s2 + $0x10] sm:$0xff]  }
   0x4   :  { %v1184_v3 = vld [vmem:[%s1732_s2 + $0x80] sm:$0xff]   ;;  %1049 = vmatpush3.bf16.msra.mxu0 %v1183_v2  ;;  %v1188_v7 = vld [vmem:[%s1732_s2 + $0x88] sm:$0xff]   ;;  %v1192_v11 = vld [vmem:[%s1732_s2 + $0x90] sm:$0xff]   ;;  %v1384_v31 = vsub.s32 0, %v1369_v26  ;;  %v58_v33 = vsub.s32 4, %v1369_v26  ;;  %v1394_v35 = vsub.s32 1, %v1369_v26 }
   0x5   :  { %1071 = vmatpush3.bf16.msra.mxu1 %v1184_v3  ;;  %1050 = vmatprep.subr.bf16.mxu0 %v1185_v4  ;;  %v1193_v12 = vld [vmem:[%s1732_s2 + $0x58] sm:$0xff]   ;;  %v1197_v16 = vld [vmem:[%s1732_s2 + $0x60] sm:$0xff]   ;;  %v1201_v20 = vld [vmem:[%s1732_s2 + $0x68] sm:$0xff]   ;;  %v114_v37 = vsub.s32 5, %v1369_v26  ;;  %v1416_v41 = vsub.s32 2, %v1369_v26  ;;  %v178_v42 = vsub.s32 6, %v1369_v26 }
   0x6   :  { %1072 = vmatprep.subr.bf16.mxu1 %v1186_v5  ;;  %v1194_v13 = vld [vmem:[%s1732_s2 + $0xd8] sm:$0xff]   ;;  %v1198_v17 = vld [vmem:[%s1732_s2 + $0xe0] sm:$0xff]   ;;  %v1202_v22 = vld [vmem:[%s1732_s2 + $0xe8] sm:$0xff]   ;;  %v1420_v43 = vsub.s32 3, %v1369_v26  ;;  %v242_v50 = vsub.s32 7, %v1369_v26 }
   0x7   :  { %v1195_v14 = vld [vmem:[%s1732_s2 + $0x18] sm:$0xff]   ;;  %v1199_v18 = vld [vmem:[%s1732_s2 + $0x20] sm:$0xff]   ;;  %v1203_v23 = vld [vmem:[%s1732_s2 + $0x28] sm:$0xff]  }
   0x8   :  { %1051 = vmatpush3.bf16.msra.mxu0 %v1187_v6  ;;  %v1196_v15 = vld [vmem:[%s1732_s2 + $0x98] sm:$0xff]   ;;  %v1200_v19 = vld [vmem:[%s1732_s2 + $0xa0] sm:$0xff]   ;;  %v1204_v24 = vld [vmem:[%s1732_s2 + $0xa8] sm:$0xff]  }
   0x9   :  { %1073 = vmatpush3.bf16.msra.mxu1 %v1188_v7  ;;  %1052 = vmatprep.subr.bf16.mxu0 %v1189_v8  ;;  %v1205_v25 = vld [vmem:[%s1732_s2 + $0x70] sm:$0xff]   ;;  %v1209_v30 = vld [vmem:[%s1732_s2 + $0x78] sm:$0xff]   ;;  %v1403_v38 = vld [vmem:[%s1734_s1] sm:$0xff] }
   0xa   :  { %1074 = vmatprep.subr.bf16.mxu1 %v1190_v9  ;;  %v1206_v27 = vld [vmem:[%s1732_s2 + $0xf0] sm:$0xff]   ;;  %v1210_v32 = vld [vmem:[%s1732_s2 + $0xf8] sm:$0xff]   ;;  %v1408_v39 = vld [vmem:[%s1733_s0] sm:$0xff]  ;;  %v59_v53 = vrot.slane %v1403_v38, %v58_v33  ;;  %v115_v60 = vrot.slane %v1403_v38, %v114_v37  ;;  %v179_v2 = vrot.slane %v1403_v38, %v178_v42 }
   0xb   :  { %v1207_v28 = vld [vmem:[%s1732_s2 + $0x30] sm:$0xff]   ;;  %v1211_v34 = vld [vmem:[%s1732_s2 + $0x38] sm:$0xff]   ;;  %v1413_v40 = vld [vmem:[%s1733_s0 + $0x40] sm:$0xff]  ;;  %v42_v44 = vunpack.c.l.bf16 %v1408_v39  ;;  %v43_v45 = vunpack.c.h.bf16 %v1408_v39 }
   0xc   :  { %1053 = vmatpush3.bf16.msra.mxu0 %v1191_v10  ;;  %v1208_v29 = vld [vmem:[%s1732_s2 + $0xb0] sm:$0xff]   ;;  %v1212_v36 = vld [vmem:[%s1732_s2 + $0xb8] sm:$0xff]   ;;  %v46_v46 = vunpack.c.l.bf16 %v1413_v40  ;;  %v1438_v49 = vld [vmem:[%s1733_s0 + $0x20] sm:$0xff]  ;;  %v47_v52 = vunpack.c.h.bf16 %v1413_v40  ;;  %v79_v63 = vrot.slane %v59_v53, %v1384_v31  ;;  %v135_v3 = vrot.slane %v115_v60, %v1394_v35 }
   0xd   :  { %1075 = vmatpush3.bf16.msra.mxu1 %v1192_v11  ;;  %1054 = vmatprep.subr.bf16.mxu0 %v1193_v12  ;;  %v1428_v47 = vld [vmem:[%s1733_s0 + $0x10] sm:$0xff]  ;;  %v1451_v56 = vld [vmem:[%s1733_s0 + $0x60] sm:$0xff]  ;;  %v164_v61 = vunpack.c.l.bf16 %v1438_v49  ;;  %v165_v0 = vunpack.c.h.bf16 %v1438_v49  ;;  %v1483_v7 = vld [vmem:[%s1734_s1 + $0x8] sm:$0xff]  ;;  %v199_v12 = vrot.slane %v179_v2, %v1416_v41 }
   0xe   :  { %1076 = vmatprep.subr.bf16.mxu1 %v1194_v13  ;;  %v1433_v48 = vld [vmem:[%s1733_s0 + $0x50] sm:$0xff]  ;;  %v100_v54 = vunpack.c.l.bf16 %v1428_v47  ;;  %v101_v55 = vunpack.c.h.bf16 %v1428_v47  ;;  %v169_v1 = vunpack.c.h.bf16 %v1451_v56  ;;  %v168_v4 = vunpack.c.l.bf16 %v1451_v56  ;;  %v1488_v8 = vld [vmem:[%s1733_s0 + $0x8] sm:$0xff] }
   0xf   :  { %v1456_v57 = vld [vmem:[%s1733_s0 + $0x30] sm:$0xff]  ;;  %v104_v58 = vunpack.c.l.bf16 %v1433_v48  ;;  %v105_v59 = vunpack.c.h.bf16 %v1433_v48  ;;  %v1493_v9 = vld [vmem:[%s1733_s0 + $0x48] sm:$0xff]  ;;  %v89_v10 = vmul.f32 %v79_v63, %v43_v45  ;;  %v93_v11 = vmul.f32 %v79_v63, %v47_v52  ;;  %v1534_v52 = vld [vmem:[%s1733_s0 + $0x38] sm:$0xff] }
  0x10   :  { %1055 = vmatpush3.bf16.msra.mxu0 %v1195_v14  ;;  %v1468_v62 = vld [vmem:[%s1733_s0 + $0x70] sm:$0xff]  ;;  %v228_v5 = vunpack.c.l.bf16 %v1456_v57  ;;  %v229_v6 = vunpack.c.h.bf16 %v1456_v57  ;;  %v1500_v14 = vld [vmem:[%s1733_s0 + $0x18] sm:$0xff]  ;;  %v213_v21 = vmul.f32 %v199_v12, %v169_v1  ;;  %v119_v48 = vrot.slane %v1483_v7, %v1394_v35 }
  0x11   :  { %1077 = vmatpush3.bf16.msra.mxu1 %v1196_v15  ;;  %1056 = vmatprep.subr.bf16.mxu0 %v1197_v16  ;;  %v232_v13 = vunpack.c.l.bf16 %v1468_v62  ;;  %v145_v15 = vmul.f32 %v135_v3, %v101_v55  ;;  %v149_v16 = vmul.f32 %v135_v3, %v105_v59  ;;  %v103_v45 = vunpack.c.h.bf16 %v1500_v14 }
  0x12   :  { %1078 = vmatprep.subr.bf16.mxu1 %v1198_v17  ;;  %v233_v17 = vunpack.c.h.bf16 %v1468_v62  ;;  %v183_v49 = vrot.slane %v1483_v7, %v1416_v41  ;;  %v247_v57 = vrot.slane %v1483_v7, %v1420_v43  ;;  %v139_v62 = vrot.slane %v119_v48, %v1394_v35  ;;  %v1229_v48 = vld [vmem:[%s1738_s8] sm:$0xff]  }
  0x14   :  { %1057 = vmatpush3.bf16.msra.mxu0 %v1199_v18  ;;  %v243_v18 = vrot.slane %v1403_v38, %v242_v50 }
  0x15   :  { %1079 = vmatpush3.bf16.msra.mxu1 %v1200_v19  ;;  %1058 = vmatprep.subr.bf16.mxu0 %v1201_v20  ;;  %v1509_v19 = vld [vmem:[%s1733_s0 + $0x58] sm:$0xff]  ;;  %v209_v20 = vmul.f32 %v199_v12, %v165_v0 }
  0x16   :  { %1080 = vmatprep.subr.bf16.mxu1 %v1202_v22  ;;  %v44_v22 = vunpack.c.l.bf16 %v1488_v8  ;;  %v106_v0 = vunpack.c.l.bf16 %v1509_v19  ;;  %v107_v1 = vunpack.c.h.bf16 %v1509_v19  ;;  %v1214_v19 = vld [vmem:[%s1735_s4 + $0x8] sm:$0xff]  }
  0x18   :  { %1059 = vmatpush3.bf16.msra.mxu0 %v1203_v23  ;;  %v45_v23 = vunpack.c.h.bf16 %v1488_v8 }
  0x19   :  { %1081 = vmatpush3.bf16.msra.mxu1 %v1204_v24  ;;  %1060 = vmatprep.subr.bf16.mxu0 %v1205_v25  ;;  %v1516_v24 = vld [vmem:[%s1733_s0 + $0x28] sm:$0xff]  ;;  %v153_v25 = vadd.f32 %v145_v15, %v89_v10 }
  0x1a   :  { %1082 = vmatprep.subr.bf16.mxu1 %v1206_v27  ;;  %v157_v27 = vadd.f32 %v149_v16, %v93_v11  ;;  %v166_v10 = vunpack.c.l.bf16 %v1516_v24  ;;  %v167_v11 = vunpack.c.h.bf16 %v1516_v24 }
  0x1b   :  { %v217_v53 = vadd.f32 %v209_v20, %v153_v25  ;;  %v187_v20 = vrot.slane %v1483_v7, %v178_v42  ;;  %v111_v42 = vrot.slane %v1403_v38, %v1394_v35 }
  0x1c   :  { %1061 = vmatpush3.bf16.msra.mxu0 %v1207_v28  ;;  %v263_v28 = vrot.slane %v243_v18, %v1420_v43  ;;  %v221_v55 = vadd.f32 %v213_v21, %v157_v27  ;;  %v230_v21 = vunpack.c.l.bf16 %v1534_v52 }
  0x1d   :  { %1083 = vmatpush3.bf16.msra.mxu1 %v1208_v29  ;;  %1062 = vmatprep.subr.bf16.mxu0 %v1209_v30  ;;  %v48_v29 = vunpack.c.l.bf16 %v1493_v9  ;;  %v1523_v30 = vld [vmem:[%s1733_s0 + $0x68] sm:$0xff] }
  0x1e   :  { %1084 = vmatprep.subr.bf16.mxu1 %v1210_v32  ;;  %v49_v32 = vunpack.c.h.bf16 %v1493_v9  ;;  %v273_v59 = vmul.f32 %v263_v28, %v229_v6  ;;  %v277_v60 = vmul.f32 %v263_v28, %v233_v17  ;;  %v1547_v6 = vld [vmem:[%s1733_s0 + $0x78] sm:$0xff]  ;;  %v170_v17 = vunpack.c.l.bf16 %v1523_v30 }
  0x1f   :  { %v231_v28 = vunpack.c.h.bf16 %v1534_v52  ;;  %v175_v52 = vrot.slane %v1403_v38, %v1416_v41 }
  0x20   :  { %1063 = vmatpush3.bf16.msra.mxu0 %v1211_v34  ;;  %v67_v34 = vrot.slane %v1483_v7, %v58_v33  ;;  %v123_v33 = vrot.slane %v1483_v7, %v114_v37  ;;  %v281_v2 = vadd.f32 %v273_v59, %v217_v53  ;;  %v285_v3 = vadd.f32 %v277_v60, %v221_v55 }
  0x21   :  { %1085 = vmatpush3.bf16.msra.mxu1 %v1212_v36  ;;  %1119 = vmatprep.subr.bf16.mxu0 %v1237_v51  ;;  %v102_v36 = vunpack.c.l.bf16 %v1500_v14  ;;  %v171_v37 = vunpack.c.h.bf16 %v1523_v30  ;;  %v55_v30 = vrot.slane %v1403_v38, %v1384_v31  ;;  %v239_v55 = vrot.slane %v1403_v38, %v1420_v43 }
  0x22   :  { %1139 = vmatprep.subr.bf16.mxu1 %v1237_v51  ;;  %v87_v63 = vrot.slane %v67_v34, %v1384_v31  ;;  %v143_v16 = vrot.slane %v123_v33, %v1394_v35  ;;  %v289_v18 = vpack.c.bf16 %v285_v3, %v281_v2  ;;  %v251_v34 = vrot.slane %v1483_v7, %v242_v50 }
  0x23   :  { %v75_v50 = vrot.slane %v55_v30, %v1384_v31  ;;  %v259_v33 = vrot.slane %v239_v55, %v1420_v43  ;;  %v63_v2 = vrot.slane %v1483_v7, %v1384_v31  ;;  %v150_v7 = vmul.f32 %v139_v62, %v106_v0  ;;  %v1222_v55 = vld [vmem:[%s1736_s6 + $0x8] sm:$0xff]  }
  0x24   :  { %v91_v12 = vmul.f32 %v87_v63, %v45_v23  ;;  %v95_v15 = vmul.f32 %v87_v63, %v49_v32  ;;  %v147_v25 = vmul.f32 %v143_v16, %v103_v45  ;;  %v151_v27 = vmul.f32 %v143_v16, %v107_v1  ;;  %587 = vmatprep.mubr.bf16.mxu0 %v289_v18 }
  0x25   :  { %v235_v23 = vunpack.c.h.bf16 %v1547_v6  ;;  %v207_v32 = vrot.slane %v187_v20, %v1416_v41  ;;  %v271_v26 = vrot.slane %v251_v34, %v1420_v43  ;;  %v131_v63 = vrot.slane %v111_v42, %v1394_v35  ;;  %v1213_v35 = vld [vmem:[%s1735_s4] sm:$0xff]   ;;  %v1218_v42 = vld [vmem:[%s1735_s4 + $0x28] sm:$0xff]  }
  0x26   :  { %v155_v53 = vadd.f32 %v147_v25, %v91_v12  ;;  %v159_v45 = vadd.f32 %v151_v27, %v95_v15  ;;  %v195_v1 = vrot.slane %v175_v52, %v1416_v41  ;;  %v88_v38 = vmul.f32 %v75_v50, %v42_v44  ;;  %v1221_v52 = vld [vmem:[%s1736_s6] sm:$0xff]  }
  0x27   :  { %v211_v59 = vmul.f32 %v207_v32, %v167_v11  ;;  %v215_v60 = vmul.f32 %v207_v32, %v171_v37  ;;  %v275_v15 = vmul.f32 %v271_v26, %v231_v28  ;;  %v279_v16 = vmul.f32 %v271_v26, %v235_v23  ;;  %v1225_v26 = vld [vmem:[%s1736_s6 + $0x20] sm:$0xff]  }
  0x28   :  { %v92_v11 = vmul.f32 %v75_v50, %v46_v46  ;;  %v144_v18 = vmul.f32 %v131_v63, %v100_v54  ;;  %v148_v37 = vmul.f32 %v131_v63, %v104_v58  ;;  %v208_v27 = vmul.f32 %v195_v1, %v164_v61  ;;  %v1226_v50 = vld [vmem:[%s1736_s6 + $0x28] sm:$0xff]  }
  0x29   :  { %v219_v3 = vadd.f32 %v211_v59, %v155_v53  ;;  %v223_v12 = vadd.f32 %v215_v60, %v159_v45  ;;  %v212_v28 = vmul.f32 %v195_v1, %v168_v4  ;;  %v272_v40 = vmul.f32 %v259_v33, %v228_v5  ;;  %v1219_v53 = vld [vmem:[%s1735_s4 + $0x30] sm:$0xff]   ;;  %v1220_v45 = vld [vmem:[%s1735_s4 + $0x38] sm:$0xff]  }
  0x2a   :  { %v152_v23 = vadd.f32 %v144_v18, %v88_v38  ;;  %v156_v39 = vadd.f32 %v148_v37, %v92_v11  ;;  %v276_v44 = vmul.f32 %v259_v33, %v232_v13  ;;  %v83_v47 = vrot.slane %v63_v2, %v1384_v31  ;;  %v1223_v59 = vld [vmem:[%s1736_s6 + $0x10] sm:$0xff]   ;;  %v1224_v60 = vld [vmem:[%s1736_s6 + $0x18] sm:$0xff]  }
  0x2b   :  { %v283_v20 = vadd.f32 %v275_v15, %v219_v3  ;;  %v287_v25 = vadd.f32 %v279_v16, %v223_v12  ;;  %v234_v54 = vunpack.c.l.bf16 %v1547_v6  ;;  %v203_v4 = vrot.slane %v183_v49, %v1416_v41  ;;  %v988_v12 = vld [vmem:[%s1737_s3] ss:$0 sm:$0xff]  ;;  %v1230_v49 = vld [vmem:[%s1738_s8 + $0x8] sm:$0xff]  }
  0x2c   :  { %v216_v56 = vadd.f32 %v208_v27, %v152_v23  ;;  %v220_v58 = vadd.f32 %v212_v28, %v156_v39  ;;  %v90_v61 = vmul.f32 %v83_v47, %v44_v22  ;;  %v94_v31 = vmul.f32 %v83_v47, %v48_v29  ;;  %v1228_v47 = vld [vmem:[%s1736_s6 + $0x38] sm:$0xff]  }
  0x2d   :  { %v291_v46 = vpack.c.bf16 %v287_v25, %v283_v20  ;;  %v267_v6 = vrot.slane %v247_v57, %v1420_v43  ;;  %v146_v32 = vmul.f32 %v139_v62, %v102_v36  ;;  %v210_v8 = vmul.f32 %v203_v4, %v166_v10  ;;  %v1215_v10 = vld [vmem:[%s1735_s4 + $0x10] sm:$0xff]   ;;  %v1234_v57 = vld [vmem:[%s1738_s8 + $0x28] sm:$0xff]  }
  0x2e   :  { %v280_v5 = vadd.f32 %v272_v40, %v216_v56  ;;  %v284_v13 = vadd.f32 %v276_v44, %v220_v58  ;;  %v214_v22 = vmul.f32 %v203_v4, %v170_v17  ;;  %v158_v29 = vadd.f32 %v150_v7, %v94_v31  ;;  %v1216_v17 = vld [vmem:[%s1735_s4 + $0x18] sm:$0xff]   ;;  %v1233_v58 = vld [vmem:[%s1738_s8 + $0x20] sm:$0xff]  }
  0x2f   :  { %628 = vmatprep.mubr.bf16.mxu1 %v291_v46  ;;  %v154_v41 = vadd.f32 %v146_v32, %v90_v61  ;;  %v274_v34 = vmul.f32 %v267_v6, %v230_v21  ;;  %v278_v30 = vmul.f32 %v267_v6, %v234_v54  ;;  %v1217_v21 = vld [vmem:[%s1735_s4 + $0x20] sm:$0xff]   ;;  %v1227_v46 = vld [vmem:[%s1736_s6 + $0x30] sm:$0xff]   ;;  %v1232_v56 = vld [vmem:[%s1738_s8 + $0x18] sm:$0xff]  }
  0x30   :  { %v288_v9 = vpack.c.bf16 %v284_v13, %v280_v5  ;;  %v222_v14 = vadd.f32 %v214_v22, %v158_v29  ;;  %v1231_v54 = vld [vmem:[%s1738_s8 + $0x10] sm:$0xff]   ;;  %v1021_v61 = vld [vmem:[%s1739_s5] ss:$0 sm:$0xff] }
  0x31   :  { %v218_v43 = vadd.f32 %v210_v8, %v154_v41  ;;  %v1235_v22 = vld [vmem:[%s1738_s8 + $0x30] sm:$0xff]  }
  0x32   :  { %588 = vmatmul.mubr.bf16.vlgmr.msra.gmra.mrb[0].mxu0 %v288_v9  ;;  %v286_v36 = vadd.f32 %v278_v30, %v222_v14  ;;  %v1030_v9 = vld [vmem:[%s1740_s7] ss:$0 sm:$0xff] }
  0x33   :  { %1120 = vmatpush3.bf16.msra.mxu0 %v1213_v35  ;;  %v282_v24 = vadd.f32 %v274_v34, %v218_v43  ;;  %1135 = vmatprep.mubr.msk.bf16.mxu0 %vm1238_vm0, %v1237_v51  ;;  %v1236_v35 = vld [vmem:[%s1738_s8 + $0x38] sm:$0xff]  }
  0x34   :  { %1121 = vmatprep.subr.bf16.mxu0 %v1237_v51 }
  0x35   :  { %v290_v0 = vpack.c.bf16 %v286_v36, %v282_v24 }
  0x37   :  { %1122 = vmatpush3.bf16.msra.mxu0 %v1214_v19  ;;  %629 = vmatmul.mubr.bf16.vlgmr.msra.gmra.mrb[0].mxu1 %v290_v0 }
  0x38   :  { %1123 = vmatprep.subr.bf16.mxu0 %v1237_v51  ;;  %1155 = vmatprep.mubr.msk.bf16.mxu1 %vm1238_vm0, %v1237_v51 }
  0x39   :  { %1140 = vmatpush3.bf16.msra.mxu1 %v1221_v52 }
  0x3a   :  { %1141 = vmatprep.subr.bf16.mxu1 %v1237_v51 }
  0x3b   :  { %1124 = vmatpush3.bf16.msra.mxu0 %v1215_v10 }
  0x3c   :  { %1125 = vmatprep.subr.bf16.mxu0 %v1237_v51 }
  0x3d   :  { %1142 = vmatpush3.bf16.msra.mxu1 %v1222_v55 }
  0x3e   :  { %1143 = vmatprep.subr.bf16.mxu1 %v1237_v51 }
  0x3f   :  { %1126 = vmatpush3.bf16.msra.mxu0 %v1216_v17 }
  0x40   :  { %1127 = vmatprep.subr.bf16.mxu0 %v1237_v51 }
  0x41   :  { %1144 = vmatpush3.bf16.msra.mxu1 %v1223_v59 }
  0x42   :  { %1145 = vmatprep.subr.bf16.mxu1 %v1237_v51 }
  0x43   :  { %1128 = vmatpush3.bf16.msra.mxu0 %v1217_v21 }
  0x44   :  { %1129 = vmatprep.subr.bf16.mxu0 %v1237_v51 }
  0x45   :  { %1146 = vmatpush3.bf16.msra.mxu1 %v1224_v60 }
  0x46   :  { %1147 = vmatprep.subr.bf16.mxu1 %v1237_v51 }
  0x47   :  { %1130 = vmatpush3.bf16.msra.mxu0 %v1218_v42 }
  0x48   :  { %1131 = vmatprep.subr.bf16.mxu0 %v1237_v51 }
  0x49   :  { %1148 = vmatpush3.bf16.msra.mxu1 %v1225_v26 }
  0x4a   :  { %1149 = vmatprep.subr.bf16.mxu1 %v1237_v51 }
  0x4b   :  { %1132 = vmatpush3.bf16.msra.mxu0 %v1219_v53 }
  0x4c   :  { %1133 = vmatprep.subr.bf16.mxu0 %v1237_v51 }
  0x4d   :  { %1150 = vmatpush3.bf16.msra.mxu1 %v1226_v50 }
  0x4e   :  { %1151 = vmatprep.subr.bf16.mxu1 %v1237_v51 }
  0x4f   :  { %1134 = vmatpush3.bf16.msra.mxu0 %v1220_v45 }
  0x50   :  { %1159 = vmatprep.subr.bf16.mxu0 %v1237_v51 }
  0x51   :  { %1152 = vmatpush3.bf16.msra.mxu1 %v1227_v46 }
  0x52   :  { %1153 = vmatprep.subr.bf16.mxu1 %v1237_v51 }
  0x55   :  { %1154 = vmatpush3.bf16.msra.mxu1 %v1228_v47 }
 0x105   :  { %v1064_v63 = vpop.f32.mrb[0].mxu0 }
 0x106   :  { %v1065_v1 = vpop.f32.mrb[1].mxu0 }
 0x107   :  { %v1066_v33 = vadd.f32 %v1065_v1, %v1064_v63  ;;  %v1067_v2 = vpop.f32.mrb[2].mxu0 }
 0x108   :  { %v1068_v3 = vpop.f32.mrb[3].mxu0 }
 0x109   :  { %v1069_v15 = vadd.f32 %v1068_v3, %v1067_v2  ;;  %v590_v38 = vadd.f32 %v1066_v33, %v988_v12 }
 0x10a   :  { %v1086_v16 = vpop.f32.mrb[0].mxu1 }
 0x10b   :  { %v1087_v11 = vpop.f32.mrb[1].mxu1  ;;  %v593_v20 = vadd.f32 %v1069_v15, %v988_v12 }
 0x10c   :  { %v1088_v18 = vadd.f32 %v1087_v11, %v1086_v16  ;;  %v1089_v37 = vpop.f32.mrb[2].mxu1 }
 0x10d   :  { %v1090_v25 = vpop.f32.mrb[3].mxu1 }
 0x10e   :  { %v631_v27 = vadd.f32 %v1088_v18, %v590_v38  ;;  %v1091_v28 = vadd.f32 %v1090_v25, %v1089_v37 }
 0x110   :  { %v634_v23 = vadd.f32 %v1091_v28, %v593_v20  ;;  %v637_v39 = vmax.f32 %v631_v27, 0.0 }
 0x112   :  { %v638_v40 = vmax.f32 %v634_v23, 0.0 }
 0x114   :  { %v639_v44 = vpack.c.bf16 %v638_v40, %v637_v39 }
 0x116   :  { %1136 = vmatmul.mubr.bf16.vlgmr.msra.gmra.mrb[4].mxu0 %v639_v44 }
 0x117   :  { %1175 = vmatprep.mubr.msk.bf16.mxu0 %vm1238_vm0, %v1237_v51  ;;  %1160 = vmatpush3.bf16.msra.mxu0 %v1229_v48 }
 0x118   :  { %1161 = vmatprep.subr.bf16.mxu0 %v1237_v51 }
 0x11b   :  { %1162 = vmatpush3.bf16.msra.mxu0 %v1230_v49 }
 0x11c   :  { %1163 = vmatprep.subr.bf16.mxu0 %v1237_v51 }
 0x11f   :  { %1164 = vmatpush3.bf16.msra.mxu0 %v1231_v54 }
 0x120   :  { %1165 = vmatprep.subr.bf16.mxu0 %v1237_v51 }
 0x123   :  { %1166 = vmatpush3.bf16.msra.mxu0 %v1232_v56 }
 0x124   :  { %1167 = vmatprep.subr.bf16.mxu0 %v1237_v51 }
 0x127   :  { %1168 = vmatpush3.bf16.msra.mxu0 %v1233_v58 }
 0x128   :  { %1169 = vmatprep.subr.bf16.mxu0 %v1237_v51 }
 0x12b   :  { %1170 = vmatpush3.bf16.msra.mxu0 %v1234_v57 }
 0x12c   :  { %1171 = vmatprep.subr.bf16.mxu0 %v1237_v51 }
 0x12f   :  { %1172 = vmatpush3.bf16.msra.mxu0 %v1235_v22 }
 0x130   :  { %1173 = vmatprep.subr.bf16.mxu0 %v1237_v51  ;;  %v1039_v51 = vld [vmem:[%s1741_s9] ss:$0 sm:$0xff] }
 0x133   :  { %1174 = vmatpush3.bf16.msra.mxu0 %v1236_v35 }
 0x1e9   :  { %v745_v31 = vpop.f32.mrb[4].mxu0 }
 0x1ea   :  { %v746_v62 = vadd.f32 %v1021_v61, %v745_v31  ;;  %v1137_v4 = vpop.f32.mrb[5].mxu0 }
 0x1eb   :  { %v748_v5 = vpop.f32.mrb[6].mxu0 }
 0x1ec   :  { %v749_v13 = vadd.f32 %v1021_v61, %v748_v5  ;;  %v1138_v6 = vpop.f32.mrb[7].mxu0  ;;  %v752_v32 = vmax.f32 %v746_v62, 0.0 }
 0x1ee   :  { %v753_v7 = vmax.f32 %v749_v13, 0.0 }
 0x1f0   :  { %v754_v8 = vpack.c.bf16 %v753_v7, %v752_v32 }
 0x1f2   :  { %1156 = vmatmul.mubr.bf16.vlgmr.msra.gmra.mrb[4].mxu1 %v754_v8 }
 0x2c5   :  { %v860_v41 = vpop.f32.mrb[4].mxu1 }
 0x2c6   :  { %v861_v29 = vadd.f32 %v1030_v9, %v860_v41  ;;  %v1157_v34 = vpop.f32.mrb[5].mxu1 }
 0x2c7   :  { %v863_v30 = vpop.f32.mrb[6].mxu1 }
 0x2c8   :  { %v864_v43 = vadd.f32 %v1030_v9, %v863_v30  ;;  %v1158_v14 = vpop.f32.mrb[7].mxu1  ;;  %v867_v19 = vmax.f32 %v861_v29, 0.0 }
 0x2ca   :  { %v868_v24 = vmax.f32 %v864_v43, 0.0 }
 0x2cc   :  { %v869_v36 = vpack.c.bf16 %v868_v24, %v867_v19 }
 0x2ce   :  { %1176 = vmatmul.mubr.bf16.vlgmr.msra.gmra.mrb[8].mxu0 %v869_v36 }
 0x3a1   :  { %v975_v0 = vpop.f32.mrb[8].mxu0 }
 0x3a2   :  { %v976_v10 = vadd.f32 %v1039_v51, %v975_v0  ;;  %v1177_v17 = vpop.f32.mrb[9].mxu0 }
 0x3a3   :  { %v978_v21 = vpop.f32.mrb[10].mxu0 }
 0x3a4   :  { %982 = vst [vmem:[%s1742_s10] sm:$0xff] %v976_v10  ;;  %v979_v42 = vadd.f32 %v1039_v51, %v978_v21  ;;  %v1178_v53 = vpop.f32.mrb[11].mxu0 }
 0x3a6   :  { %983 = vst [vmem:[%s1742_s10 + $0x8] sm:$0xff] %v979_v42 }

// kernel: newsnet_forward.1
= control target key start
LH: loop header
LB: loop body
LE: loop exit
PB: predicated region body
PF: predicated region fallthrough
CT: control target
= control target key end

     0   :  { %v52_v21 = vlaneseq  ;;  %v1237_v51 = vmov 0.0   ;;  %vm1238_vm0 = vmmov 0   ;;  %s1732_s2 = inlined_call_operand.vmem [shape: bf16[512,128], index: 2, kind: input, shape index: {}]   ;;  %s1733_s0 = inlined_call_operand.vmem [shape: bf16[16,2048], index: 0, kind: input, shape index: {}]   ;;  %s1734_s1 = inlined_call_operand.vmem [shape: f32[4,512], index: 1, kind: input, shape index: {}]   ;;  %s1735_s4 = inlined_call_operand.vmem [shape: bf16[128,128], index: 4, kind: input, shape index: {}]   ;;  %s1736_s6 = inlined_call_operand.vmem [shape: bf16[128,128], index: 6, kind: input, shape index: {}]   ;;  %s1737_s3 = inlined_call_operand.vmem [shape: f32[1,128], index: 3, kind: input, shape index: {}]   ;;  %s1738_s8 = inlined_call_operand.vmem [shape: bf16[128,128], index: 8, kind: input, shape index: {}]   ;;  %s1739_s5 = inlined_call_operand.vmem [shape: f32[1,128], index: 5, kind: input, shape index: {}]   ;;  %s1740_s7 = inlined_call_operand.vmem [shape: f32[1,128], index: 7, kind: input, shape index: {}]   ;;  %s1741_s9 = inlined_call_operand.vmem [shape: f32[1,128], index: 9, kind: input, shape index: {}]   ;;  %s1742_s10 = inlined_call_operand.vmem [shape: f32[16,128], index: 10, kind: output, shape index: {}]  }
   0x1   :  { %v1181_v0 = vld [vmem:[%s1732_s2 + $0x40] sm:$0xff]   ;;  %v1185_v4 = vld [vmem:[%s1732_s2 + $0x48] sm:$0xff]   ;;  %v1189_v8 = vld [vmem:[%s1732_s2 + $0x50] sm:$0xff]  }
   0x2   :  { %v1182_v1 = vld [vmem:[%s1732_s2 + $0xc0] sm:$0xff]   ;;  %1048 = vmatprep.subr.bf16.mxu0 %v1181_v0  ;;  %v1186_v5 = vld [vmem:[%s1732_s2 + $0xc8] sm:$0xff]   ;;  %v1190_v9 = vld [vmem:[%s1732_s2 + $0xd0] sm:$0xff]   ;;  %v1369_v26 = vshrl.u32 %v52_v21, 7 }
   0x3   :  { %v1183_v2 = vld [vmem:[%s1732_s2] sm:$0xff]   ;;  %1070 = vmatprep.subr.bf16.mxu1 %v1182_v1  ;;  %v1187_v6 = vld [vmem:[%s1732_s2 + $0x8] sm:$0xff]   ;;  %v1191_v10 = vld [vmem:[%s1732_s2 + $0x10] sm:$0xff]  }
   0x4   :  { %v1184_v3 = vld [vmem:[%s1732_s2 + $0x80] sm:$0xff]   ;;  %1049 = vmatpush3.bf16.msra.mxu0 %v1183_v2  ;;  %v1188_v7 = vld [vmem:[%s1732_s2 + $0x88] sm:$0xff]   ;;  %v1192_v11 = vld [vmem:[%s1732_s2 + $0x90] sm:$0xff]   ;;  %v1384_v31 = vsub.s32 0, %v1369_v26  ;;  %v58_v33 = vsub.s32 4, %v1369_v26  ;;  %v1394_v35 = vsub.s32 1, %v1369_v26 }
   0x5   :  { %1071 = vmatpush3.bf16.msra.mxu1 %v1184_v3  ;;  %1050 = vmatprep.subr.bf16.mxu0 %v1185_v4  ;;  %v1193_v12 = vld [vmem:[%s1732_s2 + $0x58] sm:$0xff]   ;;  %v1197_v16 = vld [vmem:[%s1732_s2 + $0x60] sm:$0xff]   ;;  %v1201_v20 = vld [vmem:[%s1732_s2 + $0x68] sm:$0xff]   ;;  %v114_v37 = vsub.s32 5, %v1369_v26  ;;  %v1416_v41 = vsub.s32 2, %v1369_v26  ;;  %v178_v42 = vsub.s32 6, %v1369_v26 }
   0x6   :  { %1072 = vmatprep.subr.bf16.mxu1 %v1186_v5  ;;  %v1194_v13 = vld [vmem:[%s1732_s2 + $0xd8] sm:$0xff]   ;;  %v1198_v17 = vld [vmem:[%s1732_s2 + $0xe0] sm:$0xff]   ;;  %v1202_v22 = vld [vmem:[%s1732_s2 + $0xe8] sm:$0xff]   ;;  %v1420_v43 = vsub.s32 3, %v1369_v26  ;;  %v242_v50 = vsub.s32 7, %v1369_v26 }
   0x7   :  { %v1195_v14 = vld [vmem:[%s1732_s2 + $0x18] sm:$0xff]   ;;  %v1199_v18 = vld [vmem:[%s1732_s2 + $0x20] sm:$0xff]   ;;  %v1203_v23 = vld [vmem:[%s1732_s2 + $0x28] sm:$0xff]  }
   0x8   :  { %1051 = vmatpush3.bf16.msra.mxu0 %v1187_v6  ;;  %v1196_v15 = vld [vmem:[%s1732_s2 + $0x98] sm:$0xff]   ;;  %v1200_v19 = vld [vmem:[%s1732_s2 + $0xa0] sm:$0xff]   ;;  %v1204_v24 = vld [vmem:[%s1732_s2 + $0xa8] sm:$0xff]  }
   0x9   :  { %1073 = vmatpush3.bf16.msra.mxu1 %v1188_v7  ;;  %1052 = vmatprep.subr.bf16.mxu0 %v1189_v8  ;;  %v1205_v25 = vld [vmem:[%s1732_s2 + $0x70] sm:$0xff]   ;;  %v1209_v30 = vld [vmem:[%s1732_s2 + $0x78] sm:$0xff]   ;;  %v1403_v38 = vld [vmem:[%s1734_s1] sm:$0xff] }
   0xa   :  { %1074 = vmatprep.subr.bf16.mxu1 %v1190_v9  ;;  %v1206_v27 = vld [vmem:[%s1732_s2 + $0xf0] sm:$0xff]   ;;  %v1210_v32 = vld [vmem:[%s1732_s2 + $0xf8] sm:$0xff]   ;;  %v1408_v39 = vld [vmem:[%s1733_s0] sm:$0xff]  ;;  %v59_v53 = vrot.slane %v1403_v38, %v58_v33  ;;  %v115_v60 = vrot.slane %v1403_v38, %v114_v37  ;;  %v179_v2 = vrot.slane %v1403_v38, %v178_v42 }
   0xb   :  { %v1207_v28 = vld [vmem:[%s1732_s2 + $0x30] sm:$0xff]   ;;  %v1211_v34 = vld [vmem:[%s1732_s2 + $0x38] sm:$0xff]   ;;  %v1413_v40 = vld [vmem:[%s1733_s0 + $0x40] sm:$0xff]  ;;  %v42_v44 = vunpack.c.l.bf16 %v1408_v39  ;;  %v43_v45 = vunpack.c.h.bf16 %v1408_v39 }
   0xc   :  { %1053 = vmatpush3.bf16.msra.mxu0 %v1191_v10  ;;  %v1208_v29 = vld [vmem:[%s1732_s2 + $0xb0] sm:$0xff]   ;;  %v1212_v36 = vld [vmem:[%s1732_s2 + $0xb8] sm:$0xff]   ;;  %v46_v46 = vunpack.c.l.bf16 %v1413_v40  ;;  %v1438_v49 = vld [vmem:[%s1733_s0 + $0x20] sm:$0xff]  ;;  %v47_v52 = vunpack.c.h.bf16 %v1413_v40  ;;  %v79_v63 = vrot.slane %v59_v53, %v1384_v31  ;;  %v135_v3 = vrot.slane %v115_v60, %v1394_v35 }
   0xd   :  { %1075 = vmatpush3.bf16.msra.mxu1 %v1192_v11  ;;  %1054 = vmatprep.subr.bf16.mxu0 %v1193_v12  ;;  %v1428_v47 = vld [vmem:[%s1733_s0 + $0x10] sm:$0xff]  ;;  %v1451_v56 = vld [vmem:[%s1733_s0 + $0x60] sm:$0xff]  ;;  %v164_v61 = vunpack.c.l.bf16 %v1438_v49  ;;  %v165_v0 = vunpack.c.h.bf16 %v1438_v49  ;;  %v1483_v7 = vld [vmem:[%s1734_s1 + $0x8] sm:$0xff]  ;;  %v199_v12 = vrot.slane %v179_v2, %v1416_v41 }
   0xe   :  { %1076 = vmatprep.subr.bf16.mxu1 %v1194_v13  ;;  %v1433_v48 = vld [vmem:[%s1733_s0 + $0x50] sm:$0xff]  ;;  %v100_v54 = vunpack.c.l.bf16 %v1428_v47  ;;  %v101_v55 = vunpack.c.h.bf16 %v1428_v47  ;;  %v169_v1 = vunpack.c.h.bf16 %v1451_v56  ;;  %v168_v4 = vunpack.c.l.bf16 %v1451_v56  ;;  %v1488_v8 = vld [vmem:[%s1733_s0 + $0x8] sm:$0xff] }
   0xf   :  { %v1456_v57 = vld [vmem:[%s1733_s0 + $0x30] sm:$0xff]  ;;  %v104_v58 = vunpack.c.l.bf16 %v1433_v48  ;;  %v105_v59 = vunpack.c.h.bf16 %v1433_v48  ;;  %v1493_v9 = vld [vmem:[%s1733_s0 + $0x48] sm:$0xff]  ;;  %v89_v10 = vmul.f32 %v79_v63, %v43_v45  ;;  %v93_v11 = vmul.f32 %v79_v63, %v47_v52  ;;  %v1534_v52 = vld [vmem:[%s1733_s0 + $0x38] sm:$0xff] }
  0x10   :  { %1055 = vmatpush3.bf16.msra.mxu0 %v1195_v14  ;;  %v1468_v62 = vld [vmem:[%s1733_s0 + $0x70] sm:$0xff]  ;;  %v228_v5 = vunpack.c.l.bf16 %v1456_v57  ;;  %v229_v6 = vunpack.c.h.bf16 %v1456_v57  ;;  %v1500_v14 = vld [vmem:[%s1733_s0 + $0x18] sm:$0xff]  ;;  %v213_v21 = vmul.f32 %v199_v12, %v169_v1  ;;  %v119_v48 = vrot.slane %v1483_v7, %v1394_v35 }
  0x11   :  { %1077 = vmatpush3.bf16.msra.mxu1 %v1196_v15  ;;  %1056 = vmatprep.subr.bf16.mxu0 %v1197_v16  ;;  %v232_v13 = vunpack.c.l.bf16 %v1468_v62  ;;  %v145_v15 = vmul.f32 %v135_v3, %v101_v55  ;;  %v149_v16 = vmul.f32 %v135_v3, %v105_v59  ;;  %v103_v45 = vunpack.c.h.bf16 %v1500_v14 }
  0x12   :  { %1078 = vmatprep.subr.bf16.mxu1 %v1198_v17  ;;  %v233_v17 = vunpack.c.h.bf16 %v1468_v62  ;;  %v183_v49 = vrot.slane %v1483_v7, %v1416_v41  ;;  %v247_v57 = vrot.slane %v1483_v7, %v1420_v43  ;;  %v139_v62 = vrot.slane %v119_v48, %v1394_v35  ;;  %v1229_v48 = vld [vmem:[%s1738_s8] sm:$0xff]  }
  0x14   :  { %1057 = vmatpush3.bf16.msra.mxu0 %v1199_v18  ;;  %v243_v18 = vrot.slane %v1403_v38, %v242_v50 }
  0x15   :  { %1079 = vmatpush3.bf16.msra.mxu1 %v1200_v19  ;;  %1058 = vmatprep.subr.bf16.mxu0 %v1201_v20  ;;  %v1509_v19 = vld [vmem:[%s1733_s0 + $0x58] sm:$0xff]  ;;  %v209_v20 = vmul.f32 %v199_v12, %v165_v0 }
  0x16   :  { %1080 = vmatprep.subr.bf16.mxu1 %v1202_v22  ;;  %v44_v22 = vunpack.c.l.bf16 %v1488_v8  ;;  %v106_v0 = vunpack.c.l.bf16 %v1509_v19  ;;  %v107_v1 = vunpack.c.h.bf16 %v1509_v19  ;;  %v1214_v19 = vld [vmem:[%s1735_s4 + $0x8] sm:$0xff]  }
  0x18   :  { %1059 = vmatpush3.bf16.msra.mxu0 %v1203_v23  ;;  %v45_v23 = vunpack.c.h.bf16 %v1488_v8 }
  0x19   :  { %1081 = vmatpush3.bf16.msra.mxu1 %v1204_v24  ;;  %1060 = vmatprep.subr.bf16.mxu0 %v1205_v25  ;;  %v1516_v24 = vld [vmem:[%s1733_s0 + $0x28] sm:$0xff]  ;;  %v153_v25 = vadd.f32 %v145_v15, %v89_v10 }
  0x1a   :  { %1082 = vmatprep.subr.bf16.mxu1 %v1206_v27  ;;  %v157_v27 = vadd.f32 %v149_v16, %v93_v11  ;;  %v166_v10 = vunpack.c.l.bf16 %v1516_v24  ;;  %v167_v11 = vunpack.c.h.bf16 %v1516_v24 }
  0x1b   :  { %v217_v53 = vadd.f32 %v209_v20, %v153_v25  ;;  %v187_v20 = vrot.slane %v1483_v7, %v178_v42  ;;  %v111_v42 = vrot.slane %v1403_v38, %v1394_v35 }
  0x1c   :  { %1061 = vmatpush3.bf16.msra.mxu0 %v1207_v28  ;;  %v263_v28 = vrot.slane %v243_v18, %v1420_v43  ;;  %v221_v55 = vadd.f32 %v213_v21, %v157_v27  ;;  %v230_v21 = vunpack.c.l.bf16 %v1534_v52 }
  0x1d   :  { %1083 = vmatpush3.bf16.msra.mxu1 %v1208_v29  ;;  %1062 = vmatprep.subr.bf16.mxu0 %v1209_v30  ;;  %v48_v29 = vunpack.c.l.bf16 %v1493_v9  ;;  %v1523_v30 = vld [vmem:[%s1733_s0 + $0x68] sm:$0xff] }
  0x1e   :  { %1084 = vmatprep.subr.bf16.mxu1 %v1210_v32  ;;  %v49_v32 = vunpack.c.h.bf16 %v1493_v9  ;;  %v273_v59 = vmul.f32 %v263_v28, %v229_v6  ;;  %v277_v60 = vmul.f32 %v263_v28, %v233_v17  ;;  %v1547_v6 = vld [vmem:[%s1733_s0 + $0x78] sm:$0xff]  ;;  %v170_v17 = vunpack.c.l.bf16 %v1523_v30 }
  0x1f   :  { %v231_v28 = vunpack.c.h.bf16 %v1534_v52  ;;  %v175_v52 = vrot.slane %v1403_v38, %v1416_v41 }
  0x20   :  { %1063 = vmatpush3.bf16.msra.mxu0 %v1211_v34  ;;  %v67_v34 = vrot.slane %v1483_v7, %v58_v33  ;;  %v123_v33 = vrot.slane %v1483_v7, %v114_v37  ;;  %v281_v2 = vadd.f32 %v273_v59, %v217_v53  ;;  %v285_v3 = vadd.f32 %v277_v60, %v221_v55 }
  0x21   :  { %1085 = vmatpush3.bf16.msra.mxu1 %v1212_v36  ;;  %1119 = vmatprep.subr.bf16.mxu0 %v1237_v51  ;;  %v102_v36 = vunpack.c.l.bf16 %v1500_v14  ;;  %v171_v37 = vunpack.c.h.bf16 %v1523_v30  ;;  %v55_v30 = vrot.slane %v1403_v38, %v1384_v31  ;;  %v239_v55 = vrot.slane %v1403_v38, %v1420_v43 }
  0x22   :  { %1139 = vmatprep.subr.bf16.mxu1 %v1237_v51  ;;  %v87_v63 = vrot.slane %v67_v34, %v1384_v31  ;;  %v143_v16 = vrot.slane %v123_v33, %v1394_v35  ;;  %v289_v18 = vpack.c.bf16 %v285_v3, %v281_v2  ;;  %v251_v34 = vrot.slane %v1483_v7, %v242_v50 }
  0x23   :  { %v75_v50 = vrot.slane %v55_v30, %v1384_v31  ;;  %v259_v33 = vrot.slane %v239_v55, %v1420_v43  ;;  %v63_v2 = vrot.slane %v1483_v7, %v1384_v31  ;;  %v150_v7 = vmul.f32 %v139_v62, %v106_v0  ;;  %v1222_v55 = vld [vmem:[%s1736_s6 + $0x8] sm:$0xff]  }
  0x24   :  { %v91_v12 = vmul.f32 %v87_v63, %v45_v23  ;;  %v95_v15 = vmul.f32 %v87_v63, %v49_v32  ;;  %v147_v25 = vmul.f32 %v143_v16, %v103_v45  ;;  %v151_v27 = vmul.f32 %v143_v16, %v107_v1  ;;  %587 = vmatprep.mubr.bf16.mxu0 %v289_v18 }
  0x25   :  { %v235_v23 = vunpack.c.h.bf16 %v1547_v6  ;;  %v207_v32 = vrot.slane %v187_v20, %v1416_v41  ;;  %v271_v26 = vrot.slane %v251_v34, %v1420_v43  ;;  %v131_v63 = vrot.slane %v111_v42, %v1394_v35  ;;  %v1213_v35 = vld [vmem:[%s1735_s4] sm:$0xff]   ;;  %v1218_v42 = vld [vmem:[%s1735_s4 + $0x28] sm:$0xff]  }
  0x26   :  { %v155_v53 = vadd.f32 %v147_v25, %v91_v12  ;;  %v159_v45 = vadd.f32 %v151_v27, %v95_v15  ;;  %v195_v1 = vrot.slane %v175_v52, %v1416_v41  ;;  %v88_v38 = vmul.f32 %v75_v50, %v42_v44  ;;  %v1221_v52 = vld [vmem:[%s1736_s6] sm:$0xff]  }
  0x27   :  { %v211_v59 = vmul.f32 %v207_v32, %v167_v11  ;;  %v215_v60 = vmul.f32 %v207_v32, %v171_v37  ;;  %v275_v15 = vmul.f32 %v271_v26, %v231_v28  ;;  %v279_v16 = vmul.f32 %v271_v26, %v235_v23  ;;  %v1225_v26 = vld [vmem:[%s1736_s6 + $0x20] sm:$0xff]  }
  0x28   :  { %v92_v11 = vmul.f32 %v75_v50, %v46_v46  ;;  %v144_v18 = vmul.f32 %v131_v63, %v100_v54  ;;  %v148_v37 = vmul.f32 %v131_v63, %v104_v58  ;;  %v208_v27 = vmul.f32 %v195_v1, %v164_v61  ;;  %v1226_v50 = vld [vmem:[%s1736_s6 + $0x28] sm:$0xff]  }
  0x29   :  { %v219_v3 = vadd.f32 %v211_v59, %v155_v53  ;;  %v223_v12 = vadd.f32 %v215_v60, %v159_v45  ;;  %v212_v28 = vmul.f32 %v195_v1, %v168_v4  ;;  %v272_v40 = vmul.f32 %v259_v33, %v228_v5  ;;  %v1219_v53 = vld [vmem:[%s1735_s4 + $0x30] sm:$0xff]   ;;  %v1220_v45 = vld [vmem:[%s1735_s4 + $0x38] sm:$0xff]  }
  0x2a   :  { %v152_v23 = vadd.f32 %v144_v18, %v88_v38  ;;  %v156_v39 = vadd.f32 %v148_v37, %v92_v11  ;;  %v276_v44 = vmul.f32 %v259_v33, %v232_v13  ;;  %v83_v47 = vrot.slane %v63_v2, %v1384_v31  ;;  %v1223_v59 = vld [vmem:[%s1736_s6 + $0x10] sm:$0xff]   ;;  %v1224_v60 = vld [vmem:[%s1736_s6 + $0x18] sm:$0xff]  }
  0x2b   :  { %v283_v20 = vadd.f32 %v275_v15, %v219_v3  ;;  %v287_v25 = vadd.f32 %v279_v16, %v223_v12  ;;  %v234_v54 = vunpack.c.l.bf16 %v1547_v6  ;;  %v203_v4 = vrot.slane %v183_v49, %v1416_v41  ;;  %v988_v12 = vld [vmem:[%s1737_s3] ss:$0 sm:$0xff]  ;;  %v1230_v49 = vld [vmem:[%s1738_s8 + $0x8] sm:$0xff]  }
  0x2c   :  { %v216_v56 = vadd.f32 %v208_v27, %v152_v23  ;;  %v220_v58 = vadd.f32 %v212_v28, %v156_v39  ;;  %v90_v61 = vmul.f32 %v83_v47, %v44_v22  ;;  %v94_v31 = vmul.f32 %v83_v47, %v48_v29  ;;  %v1228_v47 = vld [vmem:[%s1736_s6 + $0x38] sm:$0xff]  }
  0x2d   :  { %v291_v46 = vpack.c.bf16 %v287_v25, %v283_v20  ;;  %v267_v6 = vrot.slane %v247_v57, %v1420_v43  ;;  %v146_v32 = vmul.f32 %v139_v62, %v102_v36  ;;  %v210_v8 = vmul.f32 %v203_v4, %v166_v10  ;;  %v1215_v10 = vld [vmem:[%s1735_s4 + $0x10] sm:$0xff]   ;;  %v1234_v57 = vld [vmem:[%s1738_s8 + $0x28] sm:$0xff]  }
  0x2e   :  { %v280_v5 = vadd.f32 %v272_v40, %v216_v56  ;;  %v284_v13 = vadd.f32 %v276_v44, %v220_v58  ;;  %v214_v22 = vmul.f32 %v203_v4, %v170_v17  ;;  %v158_v29 = vadd.f32 %v150_v7, %v94_v31  ;;  %v1216_v17 = vld [vmem:[%s1735_s4 + $0x18] sm:$0xff]   ;;  %v1233_v58 = vld [vmem:[%s1738_s8 + $0x20] sm:$0xff]  }
  0x2f   :  { %628 = vmatprep.mubr.bf16.mxu1 %v291_v46  ;;  %v154_v41 = vadd.f32 %v146_v32, %v90_v61  ;;  %v274_v34 = vmul.f32 %v267_v6, %v230_v21  ;;  %v278_v30 = vmul.f32 %v267_v6, %v234_v54  ;;  %v1217_v21 = vld [vmem:[%s1735_s4 + $0x20] sm:$0xff]   ;;  %v1227_v46 = vld [vmem:[%s1736_s6 + $0x30] sm:$0xff]   ;;  %v1232_v56 = vld [vmem:[%s1738_s8 + $0x18] sm:$0xff]  }
  0x30   :  { %v288_v9 = vpack.c.bf16 %v284_v13, %v280_v5  ;;  %v222_v14 = vadd.f32 %v214_v22, %v158_v29  ;;  %v1231_v54 = vld [vmem:[%s1738_s8 + $0x10] sm:$0xff]   ;;  %v1021_v61 = vld [vmem:[%s1739_s5] ss:$0 sm:$0xff] }
  0x31   :  { %v218_v43 = vadd.f32 %v210_v8, %v154_v41  ;;  %v1235_v22 = vld [vmem:[%s1738_s8 + $0x30] sm:$0xff]  }
  0x32   :  { %588 = vmatmul.mubr.bf16.vlgmr.msra.gmra.mrb[0].mxu0 %v288_v9  ;;  %v286_v36 = vadd.f32 %v278_v30, %v222_v14  ;;  %v1030_v9 = vld [vmem:[%s1740_s7] ss:$0 sm:$0xff] }
  0x33   :  { %1120 = vmatpush3.bf16.msra.mxu0 %v1213_v35  ;;  %v282_v24 = vadd.f32 %v274_v34, %v218_v43  ;;  %1135 = vmatprep.mubr.msk.bf16.mxu0 %vm1238_vm0, %v1237_v51  ;;  %v1236_v35 = vld [vmem:[%s1738_s8 + $0x38] sm:$0xff]  }
  0x34   :  { %1121 = vmatprep.subr.bf16.mxu0 %v1237_v51 }
  0x35   :  { %v290_v0 = vpack.c.bf16 %v286_v36, %v282_v24 }
  0x37   :  { %1122 = vmatpush3.bf16.msra.mxu0 %v1214_v19  ;;  %629 = vmatmul.mubr.bf16.vlgmr.msra.gmra.mrb[0].mxu1 %v290_v0 }
  0x38   :  { %1123 = vmatprep.subr.bf16.mxu0 %v1237_v51  ;;  %1155 = vmatprep.mubr.msk.bf16.mxu1 %vm1238_vm0, %v1237_v51 }
  0x39   :  { %1140 = vmatpush3.bf16.msra.mxu1 %v1221_v52 }
  0x3a   :  { %1141 = vmatprep.subr.bf16.mxu1 %v1237_v51 }
  0x3b   :  { %1124 = vmatpush3.bf16.msra.mxu0 %v1215_v10 }
  0x3c   :  { %1125 = vmatprep.subr.bf16.mxu0 %v1237_v51 }
  0x3d   :  { %1142 = vmatpush3.bf16.msra.mxu1 %v1222_v55 }
  0x3e   :  { %1143 = vmatprep.subr.bf16.mxu1 %v1237_v51 }
  0x3f   :  { %1126 = vmatpush3.bf16.msra.mxu0 %v1216_v17 }
  0x40   :  { %1127 = vmatprep.subr.bf16.mxu0 %v1237_v51 }
  0x41   :  { %1144 = vmatpush3.bf16.msra.mxu1 %v1223_v59 }
  0x42   :  { %1145 = vmatprep.subr.bf16.mxu1 %v1237_v51 }
  0x43   :  { %1128 = vmatpush3.bf16.msra.mxu0 %v1217_v21 }
  0x44   :  { %1129 = vmatprep.subr.bf16.mxu0 %v1237_v51 }
  0x45   :  { %1146 = vmatpush3.bf16.msra.mxu1 %v1224_v60 }
  0x46   :  { %1147 = vmatprep.subr.bf16.mxu1 %v1237_v51 }
  0x47   :  { %1130 = vmatpush3.bf16.msra.mxu0 %v1218_v42 }
  0x48   :  { %1131 = vmatprep.subr.bf16.mxu0 %v1237_v51 }
  0x49   :  { %1148 = vmatpush3.bf16.msra.mxu1 %v1225_v26 }
  0x4a   :  { %1149 = vmatprep.subr.bf16.mxu1 %v1237_v51 }
  0x4b   :  { %1132 = vmatpush3.bf16.msra.mxu0 %v1219_v53 }
  0x4c   :  { %1133 = vmatprep.subr.bf16.mxu0 %v1237_v51 }
  0x4d   :  { %1150 = vmatpush3.bf16.msra.mxu1 %v1226_v50 }
  0x4e   :  { %1151 = vmatprep.subr.bf16.mxu1 %v1237_v51 }
  0x4f   :  { %1134 = vmatpush3.bf16.msra.mxu0 %v1220_v45 }
  0x50   :  { %1159 = vmatprep.subr.bf16.mxu0 %v1237_v51 }
  0x51   :  { %1152 = vmatpush3.bf16.msra.mxu1 %v1227_v46 }
  0x52   :  { %1153 = vmatprep.subr.bf16.mxu1 %v1237_v51 }
  0x55   :  { %1154 = vmatpush3.bf16.msra.mxu1 %v1228_v47 }
 0x105   :  { %v1064_v63 = vpop.f32.mrb[0].mxu0 }
 0x106   :  { %v1065_v1 = vpop.f32.mrb[1].mxu0 }
 0x107   :  { %v1066_v33 = vadd.f32 %v1065_v1, %v1064_v63  ;;  %v1067_v2 = vpop.f32.mrb[2].mxu0 }
 0x108   :  { %v1068_v3 = vpop.f32.mrb[3].mxu0 }
 0x109   :  { %v1069_v15 = vadd.f32 %v1068_v3, %v1067_v2  ;;  %v590_v38 = vadd.f32 %v1066_v33, %v988_v12 }
 0x10a   :  { %v1086_v16 = vpop.f32.mrb[0].mxu1 }
 0x10b   :  { %v1087_v11 = vpop.f32.mrb[1].mxu1  ;;  %v593_v20 = vadd.f32 %v1069_v15, %v988_v12 }
 0x10c   :  { %v1088_v18 = vadd.f32 %v1087_v11, %v1086_v16  ;;  %v1089_v37 = vpop.f32.mrb[2].mxu1 }
 0x10d   :  { %v1090_v25 = vpop.f32.mrb[3].mxu1 }
 0x10e   :  { %v631_v27 = vadd.f32 %v1088_v18, %v590_v38  ;;  %v1091_v28 = vadd.f32 %v1090_v25, %v1089_v37 }
 0x110   :  { %v634_v23 = vadd.f32 %v1091_v28, %v593_v20  ;;  %v637_v39 = vmax.f32 %v631_v27, 0.0 }
 0x112   :  { %v638_v40 = vmax.f32 %v634_v23, 0.0 }
 0x114   :  { %v639_v44 = vpack.c.bf16 %v638_v40, %v637_v39 }
 0x116   :  { %1136 = vmatmul.mubr.bf16.vlgmr.msra.gmra.mrb[4].mxu0 %v639_v44 }
 0x117   :  { %1175 = vmatprep.mubr.msk.bf16.mxu0 %vm1238_vm0, %v1237_v51  ;;  %1160 = vmatpush3.bf16.msra.mxu0 %v1229_v48 }
 0x118   :  { %1161 = vmatprep.subr.bf16.mxu0 %v1237_v51 }
 0x11b   :  { %1162 = vmatpush3.bf16.msra.mxu0 %v1230_v49 }
 0x11c   :  { %1163 = vmatprep.subr.bf16.mxu0 %v1237_v51 }
 0x11f   :  { %1164 = vmatpush3.bf16.msra.mxu0 %v1231_v54 }
 0x120   :  { %1165 = vmatprep.subr.bf16.mxu0 %v1237_v51 }
 0x123   :  { %1166 = vmatpush3.bf16.msra.mxu0 %v1232_v56 }
 0x124   :  { %1167 = vmatprep.subr.bf16.mxu0 %v1237_v51 }
 0x127   :  { %1168 = vmatpush3.bf16.msra.mxu0 %v1233_v58 }
 0x128   :  { %1169 = vmatprep.subr.bf16.mxu0 %v1237_v51 }
 0x12b   :  { %1170 = vmatpush3.bf16.msra.mxu0 %v1234_v57 }
 0x12c   :  { %1171 = vmatprep.subr.bf16.mxu0 %v1237_v51 }
 0x12f   :  { %1172 = vmatpush3.bf16.msra.mxu0 %v1235_v22 }
 0x130   :  { %1173 = vmatprep.subr.bf16.mxu0 %v1237_v51  ;;  %v1039_v51 = vld [vmem:[%s1741_s9] ss:$0 sm:$0xff] }
 0x133   :  { %1174 = vmatpush3.bf16.msra.mxu0 %v1236_v35 }
 0x1e9   :  { %v745_v31 = vpop.f32.mrb[4].mxu0 }
 0x1ea   :  { %v746_v62 = vadd.f32 %v1021_v61, %v745_v31  ;;  %v1137_v4 = vpop.f32.mrb[5].mxu0 }
 0x1eb   :  { %v748_v5 = vpop.f32.mrb[6].mxu0 }
 0x1ec   :  { %v749_v13 = vadd.f32 %v1021_v61, %v748_v5  ;;  %v1138_v6 = vpop.f32.mrb[7].mxu0  ;;  %v752_v32 = vmax.f32 %v746_v62, 0.0 }
 0x1ee   :  { %v753_v7 = vmax.f32 %v749_v13, 0.0 }
 0x1f0   :  { %v754_v8 = vpack.c.bf16 %v753_v7, %v752_v32 }
 0x1f2   :  { %1156 = vmatmul.mubr.bf16.vlgmr.msra.gmra.mrb[4].mxu1 %v754_v8 }
 0x2c5   :  { %v860_v41 = vpop.f32.mrb[4].mxu1 }
 0x2c6   :  { %v861_v29 = vadd.f32 %v1030_v9, %v860_v41  ;;  %v1157_v34 = vpop.f32.mrb[5].mxu1 }
 0x2c7   :  { %v863_v30 = vpop.f32.mrb[6].mxu1 }
 0x2c8   :  { %v864_v43 = vadd.f32 %v1030_v9, %v863_v30  ;;  %v1158_v14 = vpop.f32.mrb[7].mxu1  ;;  %v867_v19 = vmax.f32 %v861_v29, 0.0 }
 0x2ca   :  { %v868_v24 = vmax.f32 %v864_v43, 0.0 }
 0x2cc   :  { %v869_v36 = vpack.c.bf16 %v868_v24, %v867_v19 }
 0x2ce   :  { %1176 = vmatmul.mubr.bf16.vlgmr.msra.gmra.mrb[8].mxu0 %v869_v36 }
 0x3a1   :  { %v975_v0 = vpop.f32.mrb[8].mxu0 }
 0x3a2   :  { %v976_v10 = vadd.f32 %v1039_v51, %v975_v0  ;;  %v1177_v17 = vpop.f32.mrb[9].mxu0 }
 0x3a3   :  { %v978_v21 = vpop.f32.mrb[10].mxu0 }
 0x3a4   :  { %982 = vst [vmem:[%s1742_s10] sm:$0xff] %v976_v10  ;;  %v979_v42 = vadd.f32 %v1039_v51, %v978_v21  ;;  %v1178_v53 = vpop.f32.mrb[11].mxu0 }
 0x3a6   :  { %983 = vst [vmem:[%s1742_s10 + $0x8] sm:$0xff] %v979_v42 }

</bundles_post_ra>
